<compile_context>
chip_gen: v6e
topology: v6e:2x2x1
jax: 0.10.0
libtpu: 0.0.40
codegen_flags: <defaults>
</compile_context>

<pallas_src>
import math
import functools

import jax
import jax.numpy as jnp
import numpy as np
from jax.experimental import pallas as pl
from jax.experimental.pallas import tpu as pltpu


# ----------------------------------------------------------------------------
# Helpers
# ----------------------------------------------------------------------------
def _bcast_spec(shape):
    """BlockSpec for an input that is identical for every grid step."""
    return pl.BlockSpec(shape, lambda b: (0,) * len(shape))


def _vmem_limit_bytes():
    """Raise the scoped VMEM limit above the 16/32/32 MiB defaults, clamped safely
    below physical capacity (128/128/64 MiB on v5e/v6e/v7x)."""
    try:
        cap = int(pltpu.get_tpu_info().vmem_capacity_bytes)
        return max(min(cap - (16 << 20), 100 << 20), 32 << 20)
    except Exception:
        return 48 << 20   # safe on every generation


def _patchify(img, ps):
    """(B, 3, H, W) -> (B, num_patches, 3*ps*ps) in conv1-equivalent order (pure layout)."""
    B, C, H, W = img.shape
    gh, gw = H // ps, W // ps
    x = img.reshape(B, C, gh, ps, gw, ps)
    x = x.transpose(0, 2, 4, 1, 3, 5)          # (B, gh, gw, C, ps, ps)
    return x.reshape(B, gh * gw, C * ps * ps)


# ----------------------------------------------------------------------------
# Kernel 1: patch-embed matmul + class token + positional embedding + ln_pre
# ----------------------------------------------------------------------------
def embed_kernel(p_ref, wpe_ref, cls_ref, pos_ref, g_ref, b_ref, out_ref):
    patches = p_ref[0]                                             # (P, Cp) bf16
    emb = jnp.dot(patches, wpe_ref[...],
                  preferred_element_type=jnp.float32)              # (P, D)  bf16 x bf16 -> f32

    full = jnp.concatenate([cls_ref[...].astype(jnp.float32), emb], axis=0)
    full = full + pos_ref[...].astype(jnp.float32)                 # (L, D)

    g = g_ref[0].astype(jnp.float32)
    b = b_ref[0].astype(jnp.float32)
    mu = jnp.mean(full, axis=-1, keepdims=True)
    var = jnp.mean((full - mu) ** 2, axis=-1, keepdims=True)
    out_ref[0] = ((full - mu) * jax.lax.rsqrt(var + 1e-5) * g + b).astype(out_ref.dtype)


def embed_pallas(patches, prep, vmem_limit):
    B, P, Cp = patches.shape
    D = prep["wpe"].shape[1]
    L = P + 1
    return pl.pallas_call(
        embed_kernel,
        out_shape=jax.ShapeDtypeStruct((B, L, D), jnp.float32),
        grid=(B,),
        in_specs=[
            pl.BlockSpec((1, P, Cp), lambda b: (b, 0, 0)),
            _bcast_spec((Cp, D)),
            _bcast_spec((1, D)),
            _bcast_spec((L, D)),
            _bcast_spec((1, D)), _bcast_spec((1, D)),
        ],
        out_specs=pl.BlockSpec((1, L, D), lambda b: (b, 0, 0)),
        compiler_params=pltpu.CompilerParams(
            dimension_semantics=("parallel",), vmem_limit_bytes=vmem_limit),
    )(patches, prep["wpe"], prep["cls"], prep["pos"],
      prep["ln_pre_g"], prep["ln_pre_b"])


# ----------------------------------------------------------------------------
# Kernel 2: fused ResidualAttentionBlock (one batch element per grid step)
# ----------------------------------------------------------------------------
def make_block_kernel(n_head: int):
    """ln_1 -> MHA -> +residual -> ln_2 -> MLP(QuickGELU) -> +residual.
    Weights arrive pre-transposed (contraction-ready) in bf16; ln_1/ln_2 affine and the
    1/sqrt(head_dim) attention scale are folded into the weights/biases host-side."""

    def kernel(x_ref, wqkv_ref, bqkv_ref, wo_ref, bo_ref,
               wfc_ref, bfc_ref, wpj_ref, bpj_ref, out_ref):
        x = x_ref[0].astype(jnp.float32)                           # (L, D)
        L, D = x.shape
        hd = D // n_head

        def normalize(v):                                          # LN without affine
            mu = jnp.mean(v, axis=-1, keepdims=True)
            var = jnp.mean((v - mu) ** 2, axis=-1, keepdims=True)
            return (v - mu) * jax.lax.rsqrt(var + 1e-5)

        # ---- ln_1 (affine folded into Wqkv/bqkv) + combined QKV projection ----
        xn = normalize(x).astype(jnp.bfloat16)
        qkv = jnp.dot(xn, wqkv_ref[...],
                      preferred_element_type=jnp.float32) + bqkv_ref[0]   # (L, 3D)

        # ---- head-batched attention: (L, 3D) -> (H, L, hd), two batched dot_generals ----
        def heads(base):
            return jnp.stack(
                [qkv[:, base + h * hd: base + (h + 1) * hd] for h in range(n_head)],
                axis=0).astype(jnp.bfloat16)

        qh, kh, vh = heads(0), heads(D), heads(2 * D)

        s = jnp.einsum('hld,hmd->hlm', qh, kh,
                       preferred_element_type=jnp.float32)         # (H, L, L), no mask path
        s = s - jnp.max(s, axis=-1, keepdims=True)                 # stable softmax
        p = jnp.exp(s)
        p = p * pl.reciprocal(jnp.sum(p, axis=-1, keepdims=True), approx=True)
        o = jnp.einsum('hlm,hmd->hld', p.astype(jnp.bfloat16), vh,
                       preferred_element_type=jnp.float32)         # (H, L, hd)
        attn = jnp.concatenate([o[h] for h in range(n_head)], axis=-1)    # (L, D)

        attn = jnp.dot(attn.astype(jnp.bfloat16), wo_ref[...],
                       preferred_element_type=jnp.float32) + bo_ref[0]
        # TODO(synk): save_attn=True on the last PyTorch layer only stores the averaged
        # attention map as a module attribute (side effect); outputs are unaffected.

        x1 = x + attn

        # ---- ln_2 (affine folded into Wfc/bfc) + MLP (QuickGELU) ----
        xn2 = normalize(x1).astype(jnp.bfloat16)
        h = jnp.dot(xn2, wfc_ref[...],
                    preferred_element_type=jnp.float32) + bfc_ref[0]
        h = h * jax.nn.sigmoid(1.702 * h)                          # QuickGELU
        ffn = jnp.dot(h.astype(jnp.bfloat16), wpj_ref[...],
                      preferred_element_type=jnp.float32) + bpj_ref[0]

        out_ref[0] = (x1 + ffn).astype(out_ref.dtype)

    return kernel


def residual_block_pallas(x, bp, n_head, vmem_limit):
    B, L, D = x.shape
    x_spec = pl.BlockSpec((1, L, D), lambda b: (b, 0, 0))
    in_specs = [
        x_spec,
        _bcast_spec((D, 3 * D)), _bcast_spec((1, 3 * D)),         # Wqkv (pre-T, folded), bqkv
        _bcast_spec((D, D)), _bcast_spec((1, D)),                 # Wo (pre-T), bo
        _bcast_spec((D, 4 * D)), _bcast_spec((1, 4 * D)),         # Wfc (pre-T, folded), bfc
        _bcast_spec((4 * D, D)), _bcast_spec((1, D)),             # Wpj (pre-T), bpj
    ]
    return pl.pallas_call(
        make_block_kernel(n_head),
        out_shape=jax.ShapeDtypeStruct((B, L, D), x.dtype),
        grid=(B,),
        in_specs=in_specs,
        out_specs=x_spec,
        compiler_params=pltpu.CompilerParams(
            dimension_semantics=("parallel",), vmem_limit_bytes=vmem_limit),
    )(x, bp["wqkv"], bp["bqkv"], bp["wo"], bp["bo"],
      bp["wfc"], bp["bfc"], bp["wpj"], bp["bpj"])


# ----------------------------------------------------------------------------
# Kernel 3: ln_post(CLS) -> @ proj -> L2 normalize (and un-normalized copy)
#   ln_post affine is folded into proj / proj_bias host-side.
# ----------------------------------------------------------------------------
def head_kernel(x_ref, proj_ref, pb_ref, xp_ref, xn_ref):
    x = x_ref[...].astype(jnp.float32)                             # (B, D)
    mu = jnp.mean(x, axis=-1, keepdims=True)
    var = jnp.mean((x - mu) ** 2, axis=-1, keepdims=True)
    xhat = (x - mu) * jax.lax.rsqrt(var + 1e-5)
    z = jnp.dot(xhat, proj_ref[...], preferred_element_type=jnp.float32) + pb_ref[0]
    xn_ref[...] = z.astype(xn_ref.dtype)
    ss = jnp.sum(z * z, axis=-1, keepdims=True)
    xp_ref[...] = (z * jax.lax.rsqrt(jnp.maximum(ss, 1e-24))).astype(xp_ref.dtype)


def head_pallas(x_cls, prep, vmem_limit):
    B, D = x_cls.shape
    O = prep["proj"].shape[1]
    return pl.pallas_call(
        head_kernel,
        out_shape=(jax.ShapeDtypeStruct((B, O), jnp.float32),
                   jax.ShapeDtypeStruct((B, O), jnp.float32)),
        grid=(1,),
        in_specs=[_bcast_spec((B, D)), _bcast_spec((D, O)), _bcast_spec((1, O))],
        out_specs=(_bcast_spec((B, O)), _bcast_spec((B, O))),
        compiler_params=pltpu.CompilerParams(
            dimension_semantics=("arbitrary",), vmem_limit_bytes=vmem_limit),
    )(x_cls, prep["proj"], prep["proj_b"])


# ----------------------------------------------------------------------------
# Full forward (mask=None path of VisionTransformer_MIM)
# ----------------------------------------------------------------------------
def vit_mim_forward(img, prep, n_head, patch_size, mask=None):
    if mask is not None:
        # TODO(synk): masked-image-modeling branch (mask-token blending + 1x1-conv +
        # PixelShuffle decoder + ln_patch) is not implemented; only mask=None is supported.
        raise NotImplementedError("mask branch not implemented")
    vmem_limit = _vmem_limit_bytes()
    patches = _patchify(img, patch_size).astype(jnp.bfloat16)      # glue: layout only
    x = embed_pallas(patches, prep, vmem_limit)                    # (B, L, D) fp32
    # NOTE: PyTorch permutes to (L, N, D) and back around the Transformer; that is layout
    # only, so we stay batch-major throughout.
    # TODO(synk): next-layer weight prefetch (emit_pipeline over layers / cross-call DMA
    # futures) would overlap weight DMA with compute; kept as per-layer fused calls here.
    for bp in prep["blocks"]:
        x = residual_block_pallas(x, bp, n_head, vmem_limit)
    x_cls = x[:, 0, :]                                             # glue: CLS-token slice
    return head_pallas(x_cls, prep, vmem_limit)


# ----------------------------------------------------------------------------
# Deterministic synthetic parameters + host-side kernel preparation
# ----------------------------------------------------------------------------
def init_params(key, *, res, ps, width, layers, heads, output_dim):
    assert width % heads == 0, "d_model must be divisible by n_head"
    Cp = 3 * ps * ps
    L = (res // ps) ** 2 + 1
    cnt = [0]

    def nrm(shape, std):
        cnt[0] += 1
        return jax.random.normal(jax.random.fold_in(key, cnt[0]), shape, jnp.float32) * std

    scale = width ** -0.5
    raw = dict(
        conv_w=nrm((width, 3, ps, ps), Cp ** -0.5).astype(jnp.bfloat16),
        cls=nrm((width,), scale),
        pos=nrm((L, width), scale),
        ln_pre_g=1.0 + nrm((width,), 0.1), ln_pre_b=nrm((width,), 0.02),
        ln_post_g=1.0 + nrm((width,), 0.1), ln_post_b=nrm((width,), 0.02),
        proj=nrm((width, output_dim), scale),
        blocks=[],
    )
    for _ in range(layers):
        D = width
        raw["blocks"].append(dict(
            ln1_g=1.0 + nrm((D,), 0.1), ln1_b=nrm((D,), 0.02),
            wq=nrm((D, D), 0.05).astype(jnp.bfloat16),
            wk=nrm((D, D), 0.05).astype(jnp.bfloat16),
            wv=nrm((D, D), 0.05).astype(jnp.bfloat16),
            bq=nrm((D,), 0.02), bk=nrm((D,), 0.02), bv=nrm((D,), 0.02),
            wo=nrm((D, D), 0.05).astype(jnp.bfloat16), bo=nrm((D,), 0.02),
            ln2_g=1.0 + nrm((D,), 0.1), ln2_b=nrm((D,), 0.02),
            wfc=nrm((4 * D, D), 0.05).astype(jnp.bfloat16), bfc=nrm((4 * D,), 0.02),
            wpj=nrm((D, 4 * D), 0.05).astype(jnp.bfloat16), bpj=nrm((D,), 0.02),
        ))
    return raw


def prepare_params(raw, n_head):
    """One-time host transforms: pre-transpose weights to contraction-ready layout (bf16),
    combine Q/K/V, fold 1/sqrt(head_dim) into the Q slice, fold ln_1/ln_2/ln_post affine
    into the following projection weights & biases, reshape 1-D vectors to (1, D)."""
    f32, bf16 = jnp.float32, jnp.bfloat16
    width = raw["conv_w"].shape[0]
    Cp = raw["conv_w"].size // width

    def row(v):
        return v.astype(f32).reshape(1, -1)

    proj = raw["proj"].astype(f32)
    prep = dict(
        wpe=jnp.transpose(raw["conv_w"].astype(f32).reshape(width, Cp)).astype(bf16),  # (Cp, D)
        cls=row(raw["cls"]),
        pos=raw["pos"].astype(f32),
        ln_pre_g=row(raw["ln_pre_g"]), ln_pre_b=row(raw["ln_pre_b"]),
        proj=raw["ln_post_g"].astype(f32)[:, None] * proj,                 # ln_post gamma folded
        proj_b=(raw["ln_post_b"].astype(f32) @ proj).reshape(1, -1),       # ln_post beta folded
        blocks=[],
    )
    for p in raw["blocks"]:
        D = p["wq"].shape[0]
        sc = 1.0 / math.sqrt(D // n_head)
        g1, b1 = p["ln1_g"].astype(f32), p["ln1_b"].astype(f32)
        g2, b2 = p["ln2_g"].astype(f32), p["ln2_b"].astype(f32)

        wqkv = jnp.concatenate(
            [p["wq"].astype(f32).T * sc, p["wk"].astype(f32).T, p["wv"].astype(f32).T],
            axis=1)                                                        # (D, 3D)
        bqkv = jnp.concatenate(
            [p["bq"].astype(f32) * sc, p["bk"].astype(f32), p["bv"].astype(f32)])
        bqkv = bqkv + b1 @ wqkv                                            # fold ln1 beta
        wqkv = g1[:, None] * wqkv                                          # fold ln1 gamma

        wfc = p["wfc"].astype(f32).T                                       # (D, 4D)
        bfc = p["bfc"].astype(f32) + b2 @ wfc                              # fold ln2 beta
        wfc = g2[:, None] * wfc                                            # fold ln2 gamma

        prep["blocks"].append(dict(
            wqkv=wqkv.astype(bf16), bqkv=bqkv.reshape(1, -1),
            wo=jnp.transpose(p["wo"].astype(f32)).astype(bf16), bo=row(p["bo"]),
            wfc=wfc.astype(bf16), bfc=bfc.reshape(1, -1),
            wpj=jnp.transpose(p["wpj"].astype(f32)).astype(bf16), bpj=row(p["bpj"]),
        ))
    return prep


# ----------------------------------------------------------------------------
# Pure-JAX f32 reference (mirrors the PyTorch forward) for correctness checking
# ----------------------------------------------------------------------------
def _ln(v, g, b, eps=1e-5):
    mu = v.mean(-1, keepdims=True)
    var = ((v - mu) ** 2).mean(-1, keepdims=True)
    return (v - mu) / jnp.sqrt(var + eps) * g + b


def _ref_block(x, p, n_head):
    B, L, D = x.shape
    hd = D // n_head
    f32 = jnp.float32
    xn = _ln(x, p["ln1_g"], p["ln1_b"])
    q = xn @ p["wq"].astype(f32).T + p["bq"]
    k = xn @ p["wk"].astype(f32).T + p["bk"]
    v = xn @ p["wv"].astype(f32).T + p["bv"]
    q = q.reshape(B, L, n_head, hd).transpose(0, 2, 1, 3) / math.sqrt(hd)
    k = k.reshape(B, L, n_head, hd).transpose(0, 2, 1, 3)
    v = v.reshape(B, L, n_head, hd).transpose(0, 2, 1, 3)
    s = jnp.einsum("bhld,bhmd->bhlm", q, k)
    a = jax.nn.softmax(s, axis=-1)
    o = jnp.einsum("bhlm,bhmd->bhld", a, v).transpose(0, 2, 1, 3).reshape(B, L, D)
    o = o @ p["wo"].astype(f32).T + p["bo"]
    x = x + o
    xn2 = _ln(x, p["ln2_g"], p["ln2_b"])
    h = xn2 @ p["wfc"].astype(f32).T + p["bfc"]
    h = h * jax.nn.sigmoid(1.702 * h)
    return x + h @ p["wpj"].astype(f32).T + p["bpj"]


def _ref_forward(img, raw, n_head, ps):
    f32 = jnp.float32
    B = img.shape[0]
    width = raw["conv_w"].shape[0]
    patches = _patchify(img, ps).astype(f32)
    wpe = raw["conv_w"].astype(f32).reshape(width, -1)
    emb = patches @ wpe.T                                          # conv1 equivalent
    cls = jnp.broadcast_to(raw["cls"].astype(f32)[None, None, :], (B, 1, width))
    x = jnp.concatenate([cls, emb], axis=1) + raw["pos"]
    x = _ln(x, raw["ln_pre_g"], raw["ln_pre_b"])
    for bp in raw["blocks"]:
        x = _ref_block(x, bp, n_head)
    x_cls = _ln(x[:, 0, :], raw["ln_post_g"], raw["ln_post_b"])
    z = x_cls @ raw["proj"]
    nrm = jnp.maximum(jnp.linalg.norm(z, axis=-1, keepdims=True), 1e-12)
    return z / nrm, z


# ----------------------------------------------------------------------------
if __name__ == "__main__":
    # VisionTransformer_MIM(input_resolution=16, patch_size=4, width=32, layers=2,
    #                       heads=4, output_dim=32, mask=False); input (B, 3, 16, 16)
    RES, PS, WIDTH, LAYERS, HEADS, OUT_DIM, BATCH = 16, 4, 32, 2, 4, 32, 2

    root = jax.random.PRNGKey(0)
    k_img, k_par = jax.random.split(root)
    img = jax.random.normal(k_img, (BATCH, 3, RES, RES), jnp.float32)

    raw = init_params(k_par, res=RES, ps=PS, width=WIDTH, layers=LAYERS,
                      heads=HEADS, output_dim=OUT_DIM)
    prep = prepare_params(raw, HEADS)

    fwd = jax.jit(functools.partial(vit_mim_forward, n_head=HEADS, patch_size=PS))
    x_proj, x_nonorm = fwd(img, prep)
    x_proj, x_nonorm = jax.block_until_ready((x_proj, x_nonorm))

    r_proj, r_nonorm = _ref_forward(img, raw, HEADS, PS)
    # bf16 matmul operands (f32 accumulation) + approx softmax reciprocal -> relaxed tolerance
    np.testing.assert_allclose(np.asarray(x_proj), np.asarray(r_proj), rtol=2e-2, atol=2e-2)
    np.testing.assert_allclose(np.asarray(x_nonorm), np.asarray(r_nonorm), rtol=2e-2, atol=2e-2)

    print("KERNEL_OK")
</pallas_src>

<mosaic_0001>
module attributes {stable_mosaic.version = 11 : i64} {
  func.func @head_kernel(%arg0: i32, %arg1: memref<2x32xf32, #tpu.memory_space<vmem>>, %arg2: memref<32x32xf32, #tpu.memory_space<vmem>>, %arg3: memref<1x32xf32, #tpu.memory_space<vmem>>, %arg4: memref<2x32xf32, #tpu.memory_space<vmem>>, %arg5: memref<2x32xf32, #tpu.memory_space<vmem>>) attributes {dimension_semantics = [#tpu.dimension_semantics<arbitrary>], iteration_bounds = array<i64: 1>, scalar_prefetch = 0 : i64, scratch_operands = 0 : i64, tpu.core_type = #tpu.core_type<tc>, window_params = [{pipeline_mode = #tpu.pipeline_mode<synchronous>, transform_indices = @transform_0, window_bounds = array<i64: 2, 32>}, {pipeline_mode = #tpu.pipeline_mode<synchronous>, transform_indices = @transform_1, window_bounds = array<i64: 32, 32>}, {pipeline_mode = #tpu.pipeline_mode<synchronous>, transform_indices = @transform_2, window_bounds = array<i64: 1, 32>}, {pipeline_mode = #tpu.pipeline_mode<synchronous>, transform_indices = @transform_3, window_bounds = array<i64: 2, 32>}, {pipeline_mode = #tpu.pipeline_mode<synchronous>, transform_indices = @transform_4, window_bounds = array<i64: 2, 32>}]} {
    %c0 = arith.constant 0 : index
    %c0_0 = arith.constant 0 : index
    %0 = vector.load %arg1[%c0, %c0_0] : memref<2x32xf32, #tpu.memory_space<vmem>>, vector<2x32xf32>
    %cst = arith.constant dense<0.000000e+00> : vector<2xf32>
    %1 = vector.multi_reduction <add>, %0, %cst [1] : vector<2x32xf32> to vector<2xf32>
    %2 = vector.shape_cast %1 : vector<2xf32> to vector<2x1xf32>
    %cst_1 = arith.constant 3.200000e+01 : f32
    %3 = vector.broadcast %cst_1 : f32 to vector<2x1xf32>
    %4 = arith.divf %2, %3 : vector<2x1xf32>
    %5 = vector.broadcast %4 : vector<2x1xf32> to vector<2x32xf32>
    %6 = arith.subf %0, %5 : vector<2x32xf32>
    %7 = arith.mulf %6, %6 : vector<2x32xf32>
    %cst_2 = arith.constant dense<0.000000e+00> : vector<2xf32>
    %8 = vector.multi_reduction <add>, %7, %cst_2 [1] : vector<2x32xf32> to vector<2xf32>
    %9 = vector.shape_cast %8 : vector<2xf32> to vector<2x1xf32>
    %cst_3 = arith.constant 3.200000e+01 : f32
    %10 = vector.broadcast %cst_3 : f32 to vector<2x1xf32>
    %11 = arith.divf %9, %10 : vector<2x1xf32>
    %12 = vector.broadcast %4 : vector<2x1xf32> to vector<2x32xf32>
    %13 = arith.subf %0, %12 : vector<2x32xf32>
    %cst_4 = arith.constant 9.99999974E-6 : f32
    %14 = vector.broadcast %cst_4 : f32 to vector<2x1xf32>
    %15 = arith.addf %11, %14 : vector<2x1xf32>
    %16 = math.rsqrt %15 : vector<2x1xf32>
    %17 = vector.broadcast %16 : vector<2x1xf32> to vector<2x32xf32>
    %18 = arith.mulf %13, %17 : vector<2x32xf32>
    %c0_5 = arith.constant 0 : index
    %c0_6 = arith.constant 0 : index
    %19 = vector.load %arg2[%c0_5, %c0_6] : memref<32x32xf32, #tpu.memory_space<vmem>>, vector<32x32xf32>
    %cst_7 = arith.constant dense<0.000000e+00> : vector<2x32xf32>
    %20 = tpu.matmul %18, %19, %cst_7 {dimension_numbers = #tpu.dot_dimension_numbers<[1], [0], [0], [1], [0, 0, 1, 1], [], []>} : vector<2x32xf32>, vector<32x32xf32>, vector<2x32xf32> -> vector<2x32xf32>
    %c0_8 = arith.constant 0 : index
    %c0_9 = arith.constant 0 : index
    %21 = vector.load %arg3[%c0_8, %c0_9] : memref<1x32xf32, #tpu.memory_space<vmem>>, vector<1x32xf32>
    %22 = vector.shape_cast %21 : vector<1x32xf32> to vector<32xf32>
    %23 = vector.shape_cast %22 : vector<32xf32> to vector<1x32xf32>
    %24 = vector.broadcast %23 : vector<1x32xf32> to vector<2x32xf32>
    %25 = arith.addf %20, %24 : vector<2x32xf32>
    %c0_10 = arith.constant 0 : index
    %c0_11 = arith.constant 0 : index
    %26 = vector.load %arg5[%c0_10, %c0_11] : memref<2x32xf32, #tpu.memory_space<vmem>>, vector<2x32xf32>
    tpu.vector_store %arg5[%c0_10, %c0_11], %25 {strides = array<i32>} : memref<2x32xf32, #tpu.memory_space<vmem>>, vector<2x32xf32>,
    %27 = arith.mulf %25, %25 : vector<2x32xf32>
    %cst_12 = arith.constant dense<0.000000e+00> : vector<2xf32>
    %28 = vector.multi_reduction <add>, %27, %cst_12 [1] : vector<2x32xf32> to vector<2xf32>
    %29 = vector.shape_cast %28 : vector<2xf32> to vector<2x1xf32>
    %cst_13 = arith.constant 1.000000e-24 : f32
    %30 = vector.broadcast %cst_13 : f32 to vector<2x1xf32>
    %31 = arith.maximumf %29, %30 : vector<2x1xf32>
    %32 = math.rsqrt %31 : vector<2x1xf32>
    %33 = vector.broadcast %32 : vector<2x1xf32> to vector<2x32xf32>
    %34 = arith.mulf %25, %33 : vector<2x32xf32>
    %c0_14 = arith.constant 0 : index
    %c0_15 = arith.constant 0 : index
    %35 = vector.load %arg4[%c0_14, %c0_15] : memref<2x32xf32, #tpu.memory_space<vmem>>, vector<2x32xf32>
    tpu.vector_store %arg4[%c0_14, %c0_15], %34 {strides = array<i32>} : memref<2x32xf32, #tpu.memory_space<vmem>>, vector<2x32xf32>,
    return
  }
  func.func @transform_0(%arg0: i32) -> (i32, i32) {
    %c0_i32 = arith.constant 0 : i32
    %c0_i32_0 = arith.constant 0 : i32
    %c0_i32_1 = arith.constant 0 : i32
    return %c0_i32, %c0_i32_0 : i32, i32
  }
  func.func @transform_1(%arg0: i32) -> (i32, i32) {
    %c0_i32 = arith.constant 0 : i32
    %c0_i32_0 = arith.constant 0 : i32
    %c0_i32_1 = arith.constant 0 : i32
    return %c0_i32, %c0_i32_0 : i32, i32
  }
  func.func @transform_2(%arg0: i32) -> (i32, i32) {
    %c0_i32 = arith.constant 0 : i32
    %c0_i32_0 = arith.constant 0 : i32
    %c0_i32_1 = arith.constant 0 : i32
    return %c0_i32, %c0_i32_0 : i32, i32
  }
  func.func @transform_3(%arg0: i32) -> (i32, i32) {
    %c0_i32 = arith.constant 0 : i32
    %c0_i32_0 = arith.constant 0 : i32
    %c0_i32_1 = arith.constant 0 : i32
    return %c0_i32, %c0_i32_0 : i32, i32
  }
  func.func @transform_4(%arg0: i32) -> (i32, i32) {
    %c0_i32 = arith.constant 0 : i32
    %c0_i32_0 = arith.constant 0 : i32
    %c0_i32_1 = arith.constant 0 : i32
    return %c0_i32, %c0_i32_0 : i32, i32
  }
}

module attributes {stable_mosaic.version = 11 : i64} {
  func.func @embed_kernel(%arg0: i32, %arg1: memref<1x16x48xbf16, #tpu.memory_space<vmem>>, %arg2: memref<48x32xbf16, #tpu.memory_space<vmem>>, %arg3: memref<1x32xf32, #tpu.memory_space<vmem>>, %arg4: memref<17x32xf32, #tpu.memory_space<vmem>>, %arg5: memref<1x32xf32, #tpu.memory_space<vmem>>, %arg6: memref<1x32xf32, #tpu.memory_space<vmem>>, %arg7: memref<1x17x32xf32, #tpu.memory_space<vmem>>) attributes {dimension_semantics = [#tpu.dimension_semantics<parallel>], iteration_bounds = array<i64: 2>, scalar_prefetch = 0 : i64, scratch_operands = 0 : i64, tpu.core_type = #tpu.core_type<tc>, window_params = [{transform_indices = @transform_0, window_bounds = array<i64: 1, 16, 48>}, {pipeline_mode = #tpu.pipeline_mode<synchronous>, transform_indices = @transform_1, window_bounds = array<i64: 48, 32>}, {pipeline_mode = #tpu.pipeline_mode<synchronous>, transform_indices = @transform_2, window_bounds = array<i64: 1, 32>}, {pipeline_mode = #tpu.pipeline_mode<synchronous>, transform_indices = @transform_3, window_bounds = array<i64: 17, 32>}, {pipeline_mode = #tpu.pipeline_mode<synchronous>, transform_indices = @transform_4, window_bounds = array<i64: 1, 32>}, {pipeline_mode = #tpu.pipeline_mode<synchronous>, transform_indices = @transform_5, window_bounds = array<i64: 1, 32>}, {transform_indices = @transform_6, window_bounds = array<i64: 1, 17, 32>}]} {
    %c0 = arith.constant 0 : index
    %c0_0 = arith.constant 0 : index
    %c0_1 = arith.constant 0 : index
    %0 = vector.load %arg1[%c0, %c0_0, %c0_1] : memref<1x16x48xbf16, #tpu.memory_space<vmem>>, vector<1x16x48xbf16>
    %1 = vector.shape_cast %0 : vector<1x16x48xbf16> to vector<16x48xbf16>
    %c0_2 = arith.constant 0 : index
    %c0_3 = arith.constant 0 : index
    %2 = vector.load %arg2[%c0_2, %c0_3] : memref<48x32xbf16, #tpu.memory_space<vmem>>, vector<48x32xbf16>
    %cst = arith.constant dense<0.000000e+00> : vector<16x32xf32>
    %3 = tpu.matmul %1, %2, %cst {dimension_numbers = #tpu.dot_dimension_numbers<[1], [0], [0], [1], [0, 0, 1, 1], [], []>} : vector<16x48xbf16>, vector<48x32xbf16>, vector<16x32xf32> -> vector<16x32xf32>
    %c0_4 = arith.constant 0 : index
    %c0_5 = arith.constant 0 : index
    %4 = vector.load %arg3[%c0_4, %c0_5] : memref<1x32xf32, #tpu.memory_space<vmem>>, vector<1x32xf32>
    %5 = tpu.concatenate %4, %3 in 0 : vector<1x32xf32>, vector<16x32xf32> -> vector<17x32xf32>
    %c0_6 = arith.constant 0 : index
    %c0_7 = arith.constant 0 : index
    %6 = vector.load %arg4[%c0_6, %c0_7] : memref<17x32xf32, #tpu.memory_space<vmem>>, vector<17x32xf32>
    %7 = arith.addf %5, %6 : vector<17x32xf32>
    %c0_8 = arith.constant 0 : index
    %c0_9 = arith.constant 0 : index
    %8 = vector.load %arg5[%c0_8, %c0_9] : memref<1x32xf32, #tpu.memory_space<vmem>>, vector<1x32xf32>
    %9 = vector.shape_cast %8 : vector<1x32xf32> to vector<32xf32>
    %c0_10 = arith.constant 0 : index
    %c0_11 = arith.constant 0 : index
    %10 = vector.load %arg6[%c0_10, %c0_11] : memref<1x32xf32, #tpu.memory_space<vmem>>, vector<1x32xf32>
    %11 = vector.shape_cast %10 : vector<1x32xf32> to vector<32xf32>
    %cst_12 = arith.constant dense<0.000000e+00> : vector<17xf32>
    %12 = vector.multi_reduction <add>, %7, %cst_12 [1] : vector<17x32xf32> to vector<17xf32>
    %13 = vector.shape_cast %12 : vector<17xf32> to vector<17x1xf32>
    %cst_13 = arith.constant 3.200000e+01 : f32
    %14 = vector.broadcast %cst_13 : f32 to vector<17x1xf32>
    %15 = arith.divf %13, %14 : vector<17x1xf32>
    %16 = vector.broadcast %15 : vector<17x1xf32> to vector<17x32xf32>
    %17 = arith.subf %7, %16 : vector<17x32xf32>
    %18 = arith.mulf %17, %17 : vector<17x32xf32>
    %cst_14 = arith.constant dense<0.000000e+00> : vector<17xf32>
    %19 = vector.multi_reduction <add>, %18, %cst_14 [1] : vector<17x32xf32> to vector<17xf32>
    %20 = vector.shape_cast %19 : vector<17xf32> to vector<17x1xf32>
    %cst_15 = arith.constant 3.200000e+01 : f32
    %21 = vector.broadcast %cst_15 : f32 to vector<17x1xf32>
    %22 = arith.divf %20, %21 : vector<17x1xf32>
    %23 = vector.broadcast %15 : vector<17x1xf32> to vector<17x32xf32>
    %24 = arith.subf %7, %23 : vector<17x32xf32>
    %cst_16 = arith.constant 9.99999974E-6 : f32
    %25 = vector.broadcast %cst_16 : f32 to vector<17x1xf32>
    %26 = arith.addf %22, %25 : vector<17x1xf32>
    %27 = math.rsqrt %26 : vector<17x1xf32>
    %28 = vector.broadcast %27 : vector<17x1xf32> to vector<17x32xf32>
    %29 = arith.mulf %24, %28 : vector<17x32xf32>
    %30 = vector.shape_cast %9 : vector<32xf32> to vector<1x32xf32>
    %31 = vector.broadcast %30 : vector<1x32xf32> to vector<17x32xf32>
    %32 = arith.mulf %29, %31 : vector<17x32xf32>
    %33 = vector.shape_cast %11 : vector<32xf32> to vector<1x32xf32>
    %34 = vector.broadcast %33 : vector<1x32xf32> to vector<17x32xf32>
    %35 = arith.addf %32, %34 : vector<17x32xf32>
    %c0_17 = arith.constant 0 : index
    %c0_18 = arith.constant 0 : index
    %c0_19 = arith.constant 0 : index
    %36 = vector.load %arg7[%c0_17, %c0_18, %c0_19] : memref<1x17x32xf32, #tpu.memory_space<vmem>>, vector<1x17x32xf32>
    %37 = vector.shape_cast %36 : vector<1x17x32xf32> to vector<17x32xf32>
    %38 = vector.shape_cast %35 : vector<17x32xf32> to vector<1x17x32xf32>
    tpu.vector_store %arg7[%c0_17, %c0_18, %c0_19], %38 {strides = array<i32>} : memref<1x17x32xf32, #tpu.memory_space<vmem>>, vector<1x17x32xf32>,
    return
  }
  func.func @transform_0(%arg0: i32) -> (i32, i32, i32) {
    %c0_i32 = arith.constant 0 : i32
    %c0_i32_0 = arith.constant 0 : i32
    %c0_i32_1 = arith.constant 0 : i32
    return %arg0, %c0_i32, %c0_i32_0 : i32, i32, i32
  }
  func.func @transform_1(%arg0: i32) -> (i32, i32) {
    %c0_i32 = arith.constant 0 : i32
    %c0_i32_0 = arith.constant 0 : i32
    %c0_i32_1 = arith.constant 0 : i32
    return %c0_i32, %c0_i32_0 : i32, i32
  }
  func.func @transform_2(%arg0: i32) -> (i32, i32) {
    %c0_i32 = arith.constant 0 : i32
    %c0_i32_0 = arith.constant 0 : i32
    %c0_i32_1 = arith.constant 0 : i32
    return %c0_i32, %c0_i32_0 : i32, i32
  }
  func.func @transform_3(%arg0: i32) -> (i32, i32) {
    %c0_i32 = arith.constant 0 : i32
    %c0_i32_0 = arith.constant 0 : i32
    %c0_i32_1 = arith.constant 0 : i32
    return %c0_i32, %c0_i32_0 : i32, i32
  }
  func.func @transform_4(%arg0: i32) -> (i32, i32) {
    %c0_i32 = arith.constant 0 : i32
    %c0_i32_0 = arith.constant 0 : i32
    %c0_i32_1 = arith.constant 0 : i32
    return %c0_i32, %c0_i32_0 : i32, i32
  }
  func.func @transform_5(%arg0: i32) -> (i32, i32) {
    %c0_i32 = arith.constant 0 : i32
    %c0_i32_0 = arith.constant 0 : i32
    %c0_i32_1 = arith.constant 0 : i32
    return %c0_i32, %c0_i32_0 : i32, i32
  }
  func.func @transform_6(%arg0: i32) -> (i32, i32, i32) {
    %c0_i32 = arith.constant 0 : i32
    %c0_i32_0 = arith.constant 0 : i32
    %c0_i32_1 = arith.constant 0 : i32
    return %arg0, %c0_i32, %c0_i32_0 : i32, i32, i32
  }
}

module attributes {stable_mosaic.version = 11 : i64} {
  func.func @kernel(%arg0: i32, %arg1: memref<1x17x32xf32, #tpu.memory_space<vmem>>, %arg2: memref<32x96xbf16, #tpu.memory_space<vmem>>, %arg3: memref<1x96xf32, #tpu.memory_space<vmem>>, %arg4: memref<32x32xbf16, #tpu.memory_space<vmem>>, %arg5: memref<1x32xf32, #tpu.memory_space<vmem>>, %arg6: memref<32x128xbf16, #tpu.memory_space<vmem>>, %arg7: memref<1x128xf32, #tpu.memory_space<vmem>>, %arg8: memref<128x32xbf16, #tpu.memory_space<vmem>>, %arg9: memref<1x32xf32, #tpu.memory_space<vmem>>, %arg10: memref<1x17x32xf32, #tpu.memory_space<vmem>>) attributes {dimension_semantics = [#tpu.dimension_semantics<parallel>], iteration_bounds = array<i64: 2>, scalar_prefetch = 0 : i64, scratch_operands = 0 : i64, tpu.core_type = #tpu.core_type<tc>, window_params = [{transform_indices = @transform_0, window_bounds = array<i64: 1, 17, 32>}, {pipeline_mode = #tpu.pipeline_mode<synchronous>, transform_indices = @transform_1, window_bounds = array<i64: 32, 96>}, {pipeline_mode = #tpu.pipeline_mode<synchronous>, transform_indices = @transform_2, window_bounds = array<i64: 1, 96>}, {pipeline_mode = #tpu.pipeline_mode<synchronous>, transform_indices = @transform_3, window_bounds = array<i64: 32, 32>}, {pipeline_mode = #tpu.pipeline_mode<synchronous>, transform_indices = @transform_4, window_bounds = array<i64: 1, 32>}, {pipeline_mode = #tpu.pipeline_mode<synchronous>, transform_indices = @transform_5, window_bounds = array<i64: 32, 128>}, {pipeline_mode = #tpu.pipeline_mode<synchronous>, transform_indices = @transform_6, window_bounds = array<i64: 1, 128>}, {pipeline_mode = #tpu.pipeline_mode<synchronous>, transform_indices = @transform_7, window_bounds = array<i64: 128, 32>}, {pipeline_mode = #tpu.pipeline_mode<synchronous>, transform_indices = @transform_8, window_bounds = array<i64: 1, 32>}, {transform_indices = @transform_9, window_bounds = array<i64: 1, 17, 32>}]} {
    %c0 = arith.constant 0 : index
    %c0_0 = arith.constant 0 : index
    %c0_1 = arith.constant 0 : index
    %0 = vector.load %arg1[%c0, %c0_0, %c0_1] : memref<1x17x32xf32, #tpu.memory_space<vmem>>, vector<1x17x32xf32>
    %1 = vector.shape_cast %0 : vector<1x17x32xf32> to vector<17x32xf32>
    %cst = arith.constant dense<0.000000e+00> : vector<17xf32>
    %2 = vector.multi_reduction <add>, %1, %cst [1] : vector<17x32xf32> to vector<17xf32>
    %3 = vector.shape_cast %2 : vector<17xf32> to vector<17x1xf32>
    %cst_2 = arith.constant 3.200000e+01 : f32
    %4 = vector.broadcast %cst_2 : f32 to vector<17x1xf32>
    %5 = arith.divf %3, %4 : vector<17x1xf32>
    %6 = vector.broadcast %5 : vector<17x1xf32> to vector<17x32xf32>
    %7 = arith.subf %1, %6 : vector<17x32xf32>
    %8 = arith.mulf %7, %7 : vector<17x32xf32>
    %cst_3 = arith.constant dense<0.000000e+00> : vector<17xf32>
    %9 = vector.multi_reduction <add>, %8, %cst_3 [1] : vector<17x32xf32> to vector<17xf32>
    %10 = vector.shape_cast %9 : vector<17xf32> to vector<17x1xf32>
    %cst_4 = arith.constant 3.200000e+01 : f32
    %11 = vector.broadcast %cst_4 : f32 to vector<17x1xf32>
    %12 = arith.divf %10, %11 : vector<17x1xf32>
    %13 = vector.broadcast %5 : vector<17x1xf32> to vector<17x32xf32>
    %14 = arith.subf %1, %13 : vector<17x32xf32>
    %cst_5 = arith.constant 9.99999974E-6 : f32
    %15 = vector.broadcast %cst_5 : f32 to vector<17x1xf32>
    %16 = arith.addf %12, %15 : vector<17x1xf32>
    %17 = math.rsqrt %16 : vector<17x1xf32>
    %18 = vector.broadcast %17 : vector<17x1xf32> to vector<17x32xf32>
    %19 = arith.mulf %14, %18 : vector<17x32xf32>
    %20 = arith.truncf %19 : vector<17x32xf32> to vector<17x32xbf16>
    %c0_6 = arith.constant 0 : index
    %c0_7 = arith.constant 0 : index
    %21 = vector.load %arg2[%c0_6, %c0_7] : memref<32x96xbf16, #tpu.memory_space<vmem>>, vector<32x96xbf16>
    %cst_8 = arith.constant dense<0.000000e+00> : vector<17x96xf32>
    %22 = tpu.matmul %20, %21, %cst_8 {dimension_numbers = #tpu.dot_dimension_numbers<[1], [0], [0], [1], [0, 0, 1, 1], [], []>} : vector<17x32xbf16>, vector<32x96xbf16>, vector<17x96xf32> -> vector<17x96xf32>
    %c0_9 = arith.constant 0 : index
    %c0_10 = arith.constant 0 : index
    %23 = vector.load %arg3[%c0_9, %c0_10] : memref<1x96xf32, #tpu.memory_space<vmem>>, vector<1x96xf32>
    %24 = vector.shape_cast %23 : vector<1x96xf32> to vector<96xf32>
    %25 = vector.shape_cast %24 : vector<96xf32> to vector<1x96xf32>
    %26 = vector.broadcast %25 : vector<1x96xf32> to vector<17x96xf32>
    %27 = arith.addf %22, %26 : vector<17x96xf32>
    %28 = vector.extract_strided_slice %27 {offsets = [0, 0], sizes = [17, 8], strides = [1, 1]} : vector<17x96xf32> to vector<17x8xf32>
    %29 = vector.extract_strided_slice %27 {offsets = [0, 8], sizes = [17, 8], strides = [1, 1]} : vector<17x96xf32> to vector<17x8xf32>
    %30 = vector.extract_strided_slice %27 {offsets = [0, 16], sizes = [17, 8], strides = [1, 1]} : vector<17x96xf32> to vector<17x8xf32>
    %31 = vector.extract_strided_slice %27 {offsets = [0, 24], sizes = [17, 8], strides = [1, 1]} : vector<17x96xf32> to vector<17x8xf32>
    %32 = vector.shape_cast %28 : vector<17x8xf32> to vector<1x17x8xf32>
    %33 = vector.shape_cast %29 : vector<17x8xf32> to vector<1x17x8xf32>
    %34 = vector.shape_cast %30 : vector<17x8xf32> to vector<1x17x8xf32>
    %35 = vector.shape_cast %31 : vector<17x8xf32> to vector<1x17x8xf32>
    %36 = tpu.concatenate %32, %33, %34, %35 in 0 : vector<1x17x8xf32>, vector<1x17x8xf32>, vector<1x17x8xf32>, vector<1x17x8xf32> -> vector<4x17x8xf32>
    %37 = arith.truncf %36 : vector<4x17x8xf32> to vector<4x17x8xbf16>
    %38 = vector.extract_strided_slice %27 {offsets = [0, 32], sizes = [17, 8], strides = [1, 1]} : vector<17x96xf32> to vector<17x8xf32>
    %39 = vector.extract_strided_slice %27 {offsets = [0, 40], sizes = [17, 8], strides = [1, 1]} : vector<17x96xf32> to vector<17x8xf32>
    %40 = vector.extract_strided_slice %27 {offsets = [0, 48], sizes = [17, 8], strides = [1, 1]} : vector<17x96xf32> to vector<17x8xf32>
    %41 = vector.extract_strided_slice %27 {offsets = [0, 56], sizes = [17, 8], strides = [1, 1]} : vector<17x96xf32> to vector<17x8xf32>
    %42 = vector.shape_cast %38 : vector<17x8xf32> to vector<1x17x8xf32>
    %43 = vector.shape_cast %39 : vector<17x8xf32> to vector<1x17x8xf32>
    %44 = vector.shape_cast %40 : vector<17x8xf32> to vector<1x17x8xf32>
    %45 = vector.shape_cast %41 : vector<17x8xf32> to vector<1x17x8xf32>
    %46 = tpu.concatenate %42, %43, %44, %45 in 0 : vector<1x17x8xf32>, vector<1x17x8xf32>, vector<1x17x8xf32>, vector<1x17x8xf32> -> vector<4x17x8xf32>
    %47 = arith.truncf %46 : vector<4x17x8xf32> to vector<4x17x8xbf16>
    %48 = vector.extract_strided_slice %27 {offsets = [0, 64], sizes = [17, 8], strides = [1, 1]} : vector<17x96xf32> to vector<17x8xf32>
    %49 = vector.extract_strided_slice %27 {offsets = [0, 72], sizes = [17, 8], strides = [1, 1]} : vector<17x96xf32> to vector<17x8xf32>
    %50 = vector.extract_strided_slice %27 {offsets = [0, 80], sizes = [17, 8], strides = [1, 1]} : vector<17x96xf32> to vector<17x8xf32>
    %51 = vector.extract_strided_slice %27 {offsets = [0, 88], sizes = [17, 8], strides = [1, 1]} : vector<17x96xf32> to vector<17x8xf32>
    %52 = vector.shape_cast %48 : vector<17x8xf32> to vector<1x17x8xf32>
    %53 = vector.shape_cast %49 : vector<17x8xf32> to vector<1x17x8xf32>
    %54 = vector.shape_cast %50 : vector<17x8xf32> to vector<1x17x8xf32>
    %55 = vector.shape_cast %51 : vector<17x8xf32> to vector<1x17x8xf32>
    %56 = tpu.concatenate %52, %53, %54, %55 in 0 : vector<1x17x8xf32>, vector<1x17x8xf32>, vector<1x17x8xf32>, vector<1x17x8xf32> -> vector<4x17x8xf32>
    %57 = arith.truncf %56 : vector<4x17x8xf32> to vector<4x17x8xbf16>
    "tpu.trace_start"() <{level = 10 : i32, message = "hld,hmd->hlm"}> : () -> ()
    %cst_11 = arith.constant dense<0.000000e+00> : vector<4x17x17xf32>
    %58 = tpu.matmul %37, %47, %cst_11 {dimension_numbers = #tpu.dot_dimension_numbers<[2], [2], [1], [1], [0, 0, 0, 1, 1, 1], [0], [0]>} : vector<4x17x8xbf16>, vector<4x17x8xbf16>, vector<4x17x17xf32> -> vector<4x17x17xf32>
    "tpu.trace_stop"() : () -> ()
    %cst_12 = arith.constant dense<0xFF800000> : vector<4x17xf32>
    %59 = vector.multi_reduction <maximumf>, %58, %cst_12 [2] : vector<4x17x17xf32> to vector<4x17xf32>
    %60 = vector.shape_cast %59 : vector<4x17xf32> to vector<4x17x1xf32>
    %61 = vector.broadcast %60 : vector<4x17x1xf32> to vector<4x17x17xf32>
    %62 = arith.subf %58, %61 : vector<4x17x17xf32>
    %63 = math.exp %62 : vector<4x17x17xf32>
    %cst_13 = arith.constant dense<0.000000e+00> : vector<4x17xf32>
    %64 = vector.multi_reduction <add>, %63, %cst_13 [2] : vector<4x17x17xf32> to vector<4x17xf32>
    %65 = vector.shape_cast %64 : vector<4x17xf32> to vector<4x17x1xf32>
    %66 = tpu.reciprocal %65 {approx = true} : vector<4x17x1xf32> -> vector<4x17x1xf32>
    %67 = vector.broadcast %66 : vector<4x17x1xf32> to vector<4x17x17xf32>
    %68 = arith.mulf %63, %67 : vector<4x17x17xf32>
    %69 = arith.truncf %68 : vector<4x17x17xf32> to vector<4x17x17xbf16>
    "tpu.trace_start"() <{level = 10 : i32, message = "hlm,hmd->hld"}> : () -> ()
    %cst_14 = arith.constant dense<0.000000e+00> : vector<4x17x8xf32>
    %70 = tpu.matmul %69, %57, %cst_14 {dimension_numbers = #tpu.dot_dimension_numbers<[2], [1], [1], [2], [0, 0, 0, 1, 1, 2], [0], [0]>} : vector<4x17x17xbf16>, vector<4x17x8xbf16>, vector<4x17x8xf32> -> vector<4x17x8xf32>
    "tpu.trace_stop"() : () -> ()
    %71 = vector.extract_strided_slice %70 {offsets = [0, 0, 0], sizes = [1, 17, 8], strides = [1, 1, 1]} : vector<4x17x8xf32> to vector<1x17x8xf32>
    %72 = vector.shape_cast %71 : vector<1x17x8xf32> to vector<17x8xf32>
    %73 = vector.extract_strided_slice %70 {offsets = [1, 0, 0], sizes = [1, 17, 8], strides = [1, 1, 1]} : vector<4x17x8xf32> to vector<1x17x8xf32>
    %74 = vector.shape_cast %73 : vector<1x17x8xf32> to vector<17x8xf32>
    %75 = vector.extract_strided_slice %70 {offsets = [2, 0, 0], sizes = [1, 17, 8], strides = [1, 1, 1]} : vector<4x17x8xf32> to vector<1x17x8xf32>
    %76 = vector.shape_cast %75 : vector<1x17x8xf32> to vector<17x8xf32>
    %77 = vector.extract_strided_slice %70 {offsets = [3, 0, 0], sizes = [1, 17, 8], strides = [1, 1, 1]} : vector<4x17x8xf32> to vector<1x17x8xf32>
    %78 = vector.shape_cast %77 : vector<1x17x8xf32> to vector<17x8xf32>
    %79 = tpu.concatenate %72, %74, %76, %78 in 1 : vector<17x8xf32>, vector<17x8xf32>, vector<17x8xf32>, vector<17x8xf32> -> vector<17x32xf32>
    %80 = arith.truncf %79 : vector<17x32xf32> to vector<17x32xbf16>
    %c0_15 = arith.constant 0 : index
    %c0_16 = arith.constant 0 : index
    %81 = vector.load %arg4[%c0_15, %c0_16] : memref<32x32xbf16, #tpu.memory_space<vmem>>, vector<32x32xbf16>
    %cst_17 = arith.constant dense<0.000000e+00> : vector<17x32xf32>
    %82 = tpu.matmul %80, %81, %cst_17 {dimension_numbers = #tpu.dot_dimension_numbers<[1], [0], [0], [1], [0, 0, 1, 1], [], []>} : vector<17x32xbf16>, vector<32x32xbf16>, vector<17x32xf32> -> vector<17x32xf32>
    %c0_18 = arith.constant 0 : index
    %c0_19 = arith.constant 0 : index
    %83 = vector.load %arg5[%c0_18, %c0_19] : memref<1x32xf32, #tpu.memory_space<vmem>>, vector<1x32xf32>
    %84 = vector.shape_cast %83 : vector<1x32xf32> to vector<32xf32>
    %85 = vector.shape_cast %84 : vector<32xf32> to vector<1x32xf32>
    %86 = vector.broadcast %85 : vector<1x32xf32> to vector<17x32xf32>
    %87 = arith.addf %82, %86 : vector<17x32xf32>
    %88 = arith.addf %1, %87 : vector<17x32xf32>
    %cst_20 = arith.constant dense<0.000000e+00> : vector<17xf32>
    %89 = vector.multi_reduction <add>, %88, %cst_20 [1] : vector<17x32xf32> to vector<17xf32>
    %90 = vector.shape_cast %89 : vector<17xf32> to vector<17x1xf32>
    %cst_21 = arith.constant 3.200000e+01 : f32
    %91 = vector.broadcast %cst_21 : f32 to vector<17x1xf32>
    %92 = arith.divf %90, %91 : vector<17x1xf32>
    %93 = vector.broadcast %92 : vector<17x1xf32> to vector<17x32xf32>
    %94 = arith.subf %88, %93 : vector<17x32xf32>
    %95 = arith.mulf %94, %94 : vector<17x32xf32>
    %cst_22 = arith.constant dense<0.000000e+00> : vector<17xf32>
    %96 = vector.multi_reduction <add>, %95, %cst_22 [1] : vector<17x32xf32> to vector<17xf32>
    %97 = vector.shape_cast %96 : vector<17xf32> to vector<17x1xf32>
    %cst_23 = arith.constant 3.200000e+01 : f32
    %98 = vector.broadcast %cst_23 : f32 to vector<17x1xf32>
    %99 = arith.divf %97, %98 : vector<17x1xf32>
    %100 = vector.broadcast %92 : vector<17x1xf32> to vector<17x32xf32>
    %101 = arith.subf %88, %100 : vector<17x32xf32>
    %cst_24 = arith.constant 9.99999974E-6 : f32
    %102 = vector.broadcast %cst_24 : f32 to vector<17x1xf32>
    %103 = arith.addf %99, %102 : vector<17x1xf32>
    %104 = math.rsqrt %103 : vector<17x1xf32>
    %105 = vector.broadcast %104 : vector<17x1xf32> to vector<17x32xf32>
    %106 = arith.mulf %101, %105 : vector<17x32xf32>
    %107 = arith.truncf %106 : vector<17x32xf32> to vector<17x32xbf16>
    %c0_25 = arith.constant 0 : index
    %c0_26 = arith.constant 0 : index
    %108 = vector.load %arg6[%c0_25, %c0_26] : memref<32x128xbf16, #tpu.memory_space<vmem>>, vector<32x128xbf16>
    %cst_27 = arith.constant dense<0.000000e+00> : vector<17x128xf32>
    %109 = tpu.matmul %107, %108, %cst_27 {dimension_numbers = #tpu.dot_dimension_numbers<[1], [0], [0], [1], [0, 0, 1, 1], [], []>} : vector<17x32xbf16>, vector<32x128xbf16>, vector<17x128xf32> -> vector<17x128xf32>
    %c0_28 = arith.constant 0 : index
    %c0_29 = arith.constant 0 : index
    %110 = vector.load %arg7[%c0_28, %c0_29] : memref<1x128xf32, #tpu.memory_space<vmem>>, vector<1x128xf32>
    %111 = vector.shape_cast %110 : vector<1x128xf32> to vector<128xf32>
    %112 = vector.shape_cast %111 : vector<128xf32> to vector<1x128xf32>
    %113 = vector.broadcast %112 : vector<1x128xf32> to vector<17x128xf32>
    %114 = arith.addf %109, %113 : vector<17x128xf32>
    %cst_30 = arith.constant 1.702000e+00 : f32
    %115 = vector.broadcast %cst_30 : f32 to vector<17x128xf32>
    %116 = arith.mulf %115, %114 : vector<17x128xf32>
    %117 = arith.negf %116 : vector<17x128xf32>
    %118 = math.exp %117 : vector<17x128xf32>
    %cst_31 = arith.constant 1.000000e+00 : f32
    %119 = vector.broadcast %cst_31 : f32 to vector<17x128xf32>
    %120 = arith.addf %119, %118 : vector<17x128xf32>
    %121 = arith.divf %119, %120 : vector<17x128xf32>
    %122 = arith.mulf %114, %121 : vector<17x128xf32>
    %123 = arith.truncf %122 : vector<17x128xf32> to vector<17x128xbf16>
    %c0_32 = arith.constant 0 : index
    %c0_33 = arith.constant 0 : index
    %124 = vector.load %arg8[%c0_32, %c0_33] : memref<128x32xbf16, #tpu.memory_space<vmem>>, vector<128x32xbf16>
    %cst_34 = arith.constant dense<0.000000e+00> : vector<17x32xf32>
    %125 = tpu.matmul %123, %124, %cst_34 {dimension_numbers = #tpu.dot_dimension_numbers<[1], [0], [0], [1], [0, 0, 1, 1], [], []>} : vector<17x128xbf16>, vector<128x32xbf16>, vector<17x32xf32> -> vector<17x32xf32>
    %c0_35 = arith.constant 0 : index
    %c0_36 = arith.constant 0 : index
    %126 = vector.load %arg9[%c0_35, %c0_36] : memref<1x32xf32, #tpu.memory_space<vmem>>, vector<1x32xf32>
    %127 = vector.shape_cast %126 : vector<1x32xf32> to vector<32xf32>
    %128 = vector.shape_cast %127 : vector<32xf32> to vector<1x32xf32>
    %129 = vector.broadcast %128 : vector<1x32xf32> to vector<17x32xf32>
    %130 = arith.addf %125, %129 : vector<17x32xf32>
    %131 = arith.addf %88, %130 : vector<17x32xf32>
    %c0_37 = arith.constant 0 : index
    %c0_38 = arith.constant 0 : index
    %c0_39 = arith.constant 0 : index
    %132 = vector.load %arg10[%c0_37, %c0_38, %c0_39] : memref<1x17x32xf32, #tpu.memory_space<vmem>>, vector<1x17x32xf32>
    %133 = vector.shape_cast %132 : vector<1x17x32xf32> to vector<17x32xf32>
    %134 = vector.shape_cast %131 : vector<17x32xf32> to vector<1x17x32xf32>
    tpu.vector_store %arg10[%c0_37, %c0_38, %c0_39], %134 {strides = array<i32>} : memref<1x17x32xf32, #tpu.memory_space<vmem>>, vector<1x17x32xf32>,
    return
  }
  func.func @transform_0(%arg0: i32) -> (i32, i32, i32) {
    %c0_i32 = arith.constant 0 : i32
    %c0_i32_0 = arith.constant 0 : i32
    %c0_i32_1 = arith.constant 0 : i32
    return %arg0, %c0_i32, %c0_i32_0 : i32, i32, i32
  }
  func.func @transform_1(%arg0: i32) -> (i32, i32) {
    %c0_i32 = arith.constant 0 : i32
    %c0_i32_0 = arith.constant 0 : i32
    %c0_i32_1 = arith.constant 0 : i32
    return %c0_i32, %c0_i32_0 : i32, i32
  }
  func.func @transform_2(%arg0: i32) -> (i32, i32) {
    %c0_i32 = arith.constant 0 : i32
    %c0_i32_0 = arith.constant 0 : i32
    %c0_i32_1 = arith.constant 0 : i32
    return %c0_i32, %c0_i32_0 : i32, i32
  }
  func.func @transform_3(%arg0: i32) -> (i32, i32) {
    %c0_i32 = arith.constant 0 : i32
    %c0_i32_0 = arith.constant 0 : i32
    %c0_i32_1 = arith.constant 0 : i32
    return %c0_i32, %c0_i32_0 : i32, i32
  }
  func.func @transform_4(%arg0: i32) -> (i32, i32) {
    %c0_i32 = arith.constant 0 : i32
    %c0_i32_0 = arith.constant 0 : i32
    %c0_i32_1 = arith.constant 0 : i32
    return %c0_i32, %c0_i32_0 : i32, i32
  }
  func.func @transform_5(%arg0: i32) -> (i32, i32) {
    %c0_i32 = arith.constant 0 : i32
    %c0_i32_0 = arith.constant 0 : i32
    %c0_i32_1 = arith.constant 0 : i32
    return %c0_i32, %c0_i32_0 : i32, i32
  }
  func.func @transform_6(%arg0: i32) -> (i32, i32) {
    %c0_i32 = arith.constant 0 : i32
    %c0_i32_0 = arith.constant 0 : i32
    %c0_i32_1 = arith.constant 0 : i32
    return %c0_i32, %c0_i32_0 : i32, i32
  }
  func.func @transform_7(%arg0: i32) -> (i32, i32) {
    %c0_i32 = arith.constant 0 : i32
    %c0_i32_0 = arith.constant 0 : i32
    %c0_i32_1 = arith.constant 0 : i32
    return %c0_i32, %c0_i32_0 : i32, i32
  }
  func.func @transform_8(%arg0: i32) -> (i32, i32) {
    %c0_i32 = arith.constant 0 : i32
    %c0_i32_0 = arith.constant 0 : i32
    %c0_i32_1 = arith.constant 0 : i32
    return %c0_i32, %c0_i32_0 : i32, i32
  }
  func.func @transform_9(%arg0: i32) -> (i32, i32, i32) {
    %c0_i32 = arith.constant 0 : i32
    %c0_i32_0 = arith.constant 0 : i32
    %c0_i32_1 = arith.constant 0 : i32
    return %arg0, %c0_i32, %c0_i32_0 : i32, i32, i32
  }
}

</mosaic_0001>

<bundles_post_ra>
// kernel: vit_mim_forward.7
= control target key start
LH: loop header
LB: loop body
LE: loop exit
PB: predicated region body
PF: predicated region fallthrough
CT: control target
= control target key end

     0   :  { %10 = vsyncpa [#allocation3], 0  ;;  %vm19_vm0 = vcmask 254976   ;;  %s284_s0 = inlined_call_operand.vmem [shape: f32[2,32], index: 0, kind: input, shape index: {}]   ;;  %s285_s1 = inlined_call_operand.vmem [shape: f32[32,32], index: 1, kind: input, shape index: {}]   ;;  %s286_s2 = inlined_call_operand.vmem [shape: f32[1,32], index: 2, kind: input, shape index: {}]   ;;  %s287_s3 = inlined_call_operand.hbm [shape: f32[2,32], index: 3, kind: output, shape index: {0}]   ;;  %s288_s4 = inlined_call_operand.hbm [shape: f32[2,32], index: 4, kind: output, shape index: {1}]  }
   0x1   :  { %v18_v0 = vld [vmem:[%s284_s0] sm:$0x3] }
   0x2   :  { %11 = vsyncpa [#allocation5], 0  ;;  %v20_v1 = vsel %vm19_vm0, %v18_v0, 0.0  ;;  %v37_v7 = vld [vmem:[%s285_s1 + $0x18] sm:$0xff]  ;;  %v226_v8 = vmov 0.0   ;;  %v36_v9 = vld [vmem:[%s285_s1 + $0x10] sm:$0xff] }
   0x3   :  { %21 = vadd.xlane.f32.xlu0 %v20_v1  ;;  %163 = vmatprep.subr.mxu0 %v226_v8  ;;  %vm227_vm1 = vmmov 0   ;;  %v35_v10 = vld [vmem:[%s285_s1 + $0x8] sm:$0xff]  ;;  %v34_v11 = vld [vmem:[%s285_s1] sm:$0xff]  ;;  %vm45_vm2 = vcmask 261120   ;;  %s228_s1 = smov [#allocation4]  }
   0x4   :  { %171 = vmatprep.mubr.msk.f32.mxu0 %vm227_vm1, %v226_v8  ;;  %164 = vmatpush3.msra.mxu0 %v37_v7  ;;  %v156_v17 = vld [vmem:[%s286_s2] ss:$0 sm:$0xff]  ;;  %s144_s26 = sshll.u32 %s228_s1, 4  ;;  %s145_s26 = int_to_ptr.vmem [resolvable:$true] %s144_s26 }
   0x5   :  { %165 = vmatprep.subr.mxu0 %v226_v8  ;;  %s182_s27 = scalar_lea.vmem %s145_s26, 32  ;;  %p187_p1 = scmp.lt.s32.totalorder %s145_s26, %s145_s26 }
   0x6   :  { %166 = vmatpush3.msra.mxu0 %v36_v9  ;;  %p183_p0 = scmp.ne.s32.totalorder %s145_s26, %s182_s27  ;;  %p188_p2 = scmp.lt.s32.totalorder %s182_s27, %s182_s27 }
   0x7   :  { %167 = vmatprep.subr.mxu0 %v226_v8 }
   0x8   :  { %168 = vmatpush3.msra.mxu0 %v35_v10  ;;  %p189_p3 = por %p188_p2, %p187_p1 }
   0x9   :  { %169 = vmatprep.subr.mxu0 %v226_v8 }
   0xa   :  { %170 = vmatpush3.msra.mxu0 %v34_v11  ;;  %p190_p4 = pnand %p189_p3, %p183_p0 }
  0x8c   :  { %v22_v2 = vpop.xlane.xlu0 %21 }
  0x8d   :  { %v24_v3 = vmul.f32 0.03125, %v22_v2 }
  0x8f   :  { %v25_v4 = vsub.f32 %v18_v0, %v24_v3 }
  0x91   :  { %v26_v5 = vmul.f32 %v25_v4, %v25_v4 }
  0x93   :  { %v27_v6 = vsel %vm19_vm0, %v26_v5, 0.0 }
  0x94   :  { %28 = vadd.xlane.f32.xlu0 %v27_v6 }
 0x11d   :  { %v29_v12 = vpop.xlane.xlu0 %28 }
 0x11e   :  { %v30_v13 = vmul.f32 0.03125, %v29_v12 }
 0x120   :  { %v31_v14 = vadd.f32 1e-05, %v30_v13 }
 0x122   :  { %178 = vrsqrt.f32 %v31_v14 }
 0x12f   :  { %v179_v15 = vpop.eup %178 }
 0x130   :  { %v33_v16 = vmul.f32 %v179_v15, %v25_v4 }
 0x132   :  { %172 = vmatmul.mubr.msk.f32.vlgmr.msra.gmra.mxu0 %vm45_vm2, %v33_v16 }
 0x1f2   :  { %v115_v18 = vpop.f32.mrf.mxu0 }
 0x1f3   :  { %v116_v19 = vadd.f32 %v156_v17, %v115_v18 }
 0x1f4   :  { %v173_v20 = vpop.f32.mrf.mxu0 }
 0x1f5   :  { %119 = vst.msk [vmem:[#allocation4] sm:$0x3] %vm19_vm0, %v116_v19  ;;  %v120_v21 = vmul.f32 %v116_v19, %v116_v19 }
 0x1f7   :  { %v121_v22 = vsel %vm19_vm0, %v120_v21, 0.0 }
 0x1f8   :  { %122 = vadd.xlane.f32.xlu1 %v121_v22 }
 0x1f9   :  { %193 = shalt.err (!%p190_p4)
}
 0x1fa   :  { %147 = dma.vmem_to_hbm [thread:$0]  %s145_s26, 32, %s288_s4, [#allocation5]  }
 0x1fb   :  { %s229_s29 = smov [#allocation2]  }
 0x1fc   :  { %s134_s30 = sshll.u32 %s229_s29, 4  ;;  %s135_s30 = int_to_ptr.vmem [resolvable:$true] %s134_s30 }
 0x1fd   :  { %s202_s5 = scalar_lea.vmem %s135_s30, 32  ;;  %p207_p6 = scmp.lt.s32.totalorder %s135_s30, %s135_s30 }
 0x1fe   :  { %p203_p5 = scmp.ne.s32.totalorder %s135_s30, %s202_s5  ;;  %p208_p7 = scmp.lt.s32.totalorder %s202_s5, %s202_s5 }
 0x200   :  { %p209_p8 = por %p208_p7, %p207_p6 }
 0x202   :  { %p210_p9 = pnand %p209_p8, %p203_p5 }
 0x281   :  { %v123_v23 = vpop.xlane.xlu1 %122 }
 0x282   :  { %v124_v24 = vmax.f32 %v123_v23, 1e-24 }
 0x284   :  { %180 = vrsqrt.f32 %v124_v24 }
 0x291   :  { %v181_v25 = vpop.eup %180 }
 0x292   :  { %v126_v26 = vmul.f32 %v181_v25, %v116_v19 }
 0x294   :  { %127 = vst.msk [vmem:[#allocation2] sm:$0x3] %vm19_vm0, %v126_v26 }
 0x295   :  { %213 = shalt.err (!%p210_p9)
}
 0x296   :  { %137 = dma.vmem_to_hbm [thread:$0]  %s135_s30, 32, %s287_s3, [#allocation3]  }
 0x297   :  { %222 = dma.done.wait [#allocation3], 32  }
 0x298   :  { %223 = vsyncadd [#allocation3], 4294967264 }
 0x299   :  { %224 = dma.done.wait [#allocation5], 32  }
 0x29a   :  { %225 = vsyncadd [#allocation5], 4294967264 }
 0x29b   :  { %154 = vsyncpa [#allocation3], 1 }
 0x29c   :  { %155 = vsyncpa [#allocation5], 1 }

// kernel: vit_mim_forward.4
= control target key start
LH: loop header
LB: loop body
LE: loop exit
PB: predicated region body
PF: predicated region fallthrough
CT: control target
= control target key end

     0   :  { %s564_s21 = smov 0   ;;  %s623_s0 = inlined_call_operand.vmem [shape: bf16[2,16,48], index: 0, kind: input, shape index: {}]   ;;  %s624_s1 = inlined_call_operand.vmem [shape: bf16[48,32], index: 1, kind: input, shape index: {}]   ;;  %s625_s2 = inlined_call_operand.vmem [shape: f32[1,32], index: 2, kind: input, shape index: {}]   ;;  %s626_s3 = inlined_call_operand.vmem [shape: f32[17,32], index: 3, kind: input, shape index: {}]   ;;  %s627_s4 = inlined_call_operand.vmem [shape: f32[1,32], index: 4, kind: input, shape index: {}]   ;;  %s628_s5 = inlined_call_operand.vmem [shape: f32[1,32], index: 5, kind: input, shape index: {}]   ;;  %s629_s6 = inlined_call_operand.vmem [shape: f32[2,17,32], index: 6, kind: output, shape index: {}]  }
   0x1 LB: > { %s466_s22 = sadd.s32 4294967295, %s525_s21   ;;  %p470_p0 = scmp.ge.s32.totalorder %s525_s21, 1  ;;  %s525_s21 = sphi %s564_s21, %s16_s21  }
   0x2   : > { %p212_p1 = scmp.lt.s32.totalorder %s525_s21, 3 }
   0x4   : > { %p213_p2 = pnand %p470_p0, %p212_p1 }
   0x5   : > { %p242_p3 = scmp.lt.s32.totalorder (!%p213_p2), %s466_s22, 1 }
   0x6   : > { %216 = sbr.rel (%p213_p2) target bundleno = 536 (0x218), region = 44 }
   0xb   : > { %v509_v0 = vld [vmem:[%s624_s1 + $0x10] sm:$0xff]   ;;  %v527_v1 = vmov 0.0   ;;  %v510_v2 = vld [vmem:[%s624_s1 + $0x8] sm:$0xff]   ;;  %vm528_vm0 = vmmov 0   ;;  %s631_s22 = smov (!%p242_p3, %s466_s22), 1  ;;  %v511_v3 = vld [vmem:[%s624_s1] sm:$0xff]  }
   0xc   : > { %488 = vmatprep.subr.bf16.mxu0 %v527_v1  ;;  %494 = vmatprep.mubr.msk.bf16.mxu0 %vm528_vm0, %v527_v1  ;;  %s483_s29 = sshll.u32 %s631_s22, 3  ;;  %vm284_vm1 = vcmask 392192   ;;  %v329_v6 = vld [vmem:[%s625_s2] sm:$0x1]  ;;  %vm332_vm2 = vcmask 1040384   ;;  %vm348_vm3 = vcmask 261120  }
   0xd   : > { %489 = vmatpush3.bf16.msra.mxu0 %v509_v0  ;;  %s246_s8 = scalar_lea.vmem %s623_s0, %s483_s29  ;;  %v340_v8 = vld [vmem:[%s626_s3] sm:$0xff]  ;;  %v342_v13 = vld [vmem:[%s626_s3 + $0x10] sm:$0x1]  ;;  %v341_v15 = vld [vmem:[%s626_s3 + $0x8] sm:$0xff]  ;;  %vm355_vm4 = vcmask 253952   ;;  %s498_s17 = smul.u32 24, %s631_s22 }
   0xe   : > { %490 = vmatprep.subr.bf16.mxu0 %v527_v1  ;;  %v512_v4 = vld [vmem:[%s246_s8] sm:$0xff]  }
   0xf   : > { %v479_v48 = vld [vmem:[%s627_s4] ss:$0 sm:$0xff]  ;;  %s251_s26 = scalar_lea.vmem %s629_s6, %s498_s17 }
  0x10   : > { %v480_v50 = vld [vmem:[%s628_s5] ss:$0 sm:$0xff] }
  0x11   : > { %491 = vmatpush3.bf16.msra.mxu0 %v510_v2 }
  0x12   : > { %492 = vmatprep.subr.bf16.mxu0 %v527_v1 }
  0x15   : > { %493 = vmatpush3.bf16.msra.mxu0 %v511_v3 }
  0x18   : > { %495 = vmatmul.mubr.msk.bf16.vlgmr.msra.gmra.mxu0 %vm284_vm1, %v512_v4 }
  0xd8   : > { %v322_v5 = vpop.f32.mrf.mxu0 }
  0xd9   : > { %v333_v7 = vrot.slane %v322_v5, 7 }
  0xda   : > { %v496_v9 = vpop.f32.mrf.mxu0 }
  0xdb   : > { %v339_v10 = vsel %vm332_vm2, %v329_v6, %v333_v7 }
  0xdc   : > { %v325_v11 = vpop.f32.mrf.mxu0  ;;  %v343_v12 = vadd.f32 %v340_v8, %v339_v10 }
  0xdd   : > { %v334_v14 = vrot.slane %v325_v11, 7 }
  0xde   : > { %v497_v16 = vpop.f32.mrf.mxu0  ;;  %v349_v17 = vsel %vm348_vm3, %v343_v12, 0.0 }
  0xdf   : > { %350 = vadd.xlane.f32.xlu0 %v349_v17  ;;  %v345_v18 = vadd.f32 %v342_v13, %v334_v14  ;;  %v335_v19 = vsel %vm332_vm2, %v333_v7, %v334_v14 }
  0xe0   : > { %v344_v20 = vadd.f32 %v341_v15, %v335_v19 }
  0xe1   : > { %v356_v21 = vsel %vm355_vm4, %v345_v18, 0.0 }
  0xe2   : > { %357 = vadd.xlane.f32.xlu1 %v356_v21  ;;  %v352_v22 = vsel %vm348_vm3, %v344_v20, 0.0 }
  0xe3   : > { %353 = vadd.xlane.f32.xlu0 %v352_v22 }
 0x168   : > { %v351_v23 = vpop.xlane.xlu0 %350 }
 0x169   : > { %v360_v24 = vmul.f32 0.03125, %v351_v23 }
 0x16b   : > { %v363_v25 = vsub.f32 %v343_v12, %v360_v24  ;;  %v358_v26 = vpop.xlane.xlu1 %357 }
 0x16c   : > { %v362_v27 = vmul.f32 0.03125, %v358_v26  ;;  %v354_v28 = vpop.xlane.xlu0 %353 }
 0x16d   : > { %v361_v29 = vmul.f32 0.03125, %v354_v28  ;;  %v366_v30 = vmul.f32 %v363_v25, %v363_v25 }
 0x16e   : > { %v365_v31 = vsub.f32 %v345_v18, %v362_v27 }
 0x16f   : > { %v364_v32 = vsub.f32 %v344_v20, %v361_v29  ;;  %v369_v33 = vsel %vm348_vm3, %v366_v30, 0.0 }
 0x170   : > { %370 = vadd.xlane.f32.xlu1 %v369_v33  ;;  %v368_v34 = vmul.f32 %v365_v31, %v365_v31 }
 0x171   : > { %v367_v35 = vmul.f32 %v364_v32, %v364_v32 }
 0x172   : > { %v375_v36 = vsel %vm355_vm4, %v368_v34, 0.0 }
 0x173   : > { %v372_v37 = vsel %vm348_vm3, %v367_v35, 0.0 }
 0x174   : > { %376 = vadd.xlane.f32.xlu1 %v375_v36  ;;  %373 = vadd.xlane.f32.xlu0 %v372_v37 }
 0x1f9   : > { %v371_v38 = vpop.xlane.xlu1 %370 }
 0x1fa   : > { %v378_v39 = vmul.f32 0.03125, %v371_v38 }
 0x1fc   : > { %v381_v40 = vadd.f32 1e-05, %v378_v39 }
 0x1fd   : > { %v377_v41 = vpop.xlane.xlu1 %376  ;;  %v374_v42 = vpop.xlane.xlu0 %373 }
 0x1fe   : > { %513 = vrsqrt.f32 %v381_v40  ;;  %v380_v43 = vmul.f32 0.03125, %v377_v41  ;;  %v379_v44 = vmul.f32 0.03125, %v374_v42 }
 0x200   : > { %v383_v45 = vadd.f32 1e-05, %v380_v43  ;;  %v382_v46 = vadd.f32 1e-05, %v379_v44 }
 0x202   : > { %515 = vrsqrt.f32 %v383_v45 }
 0x203   : > { %517 = vrsqrt.f32 %v382_v46 }
 0x20b   : > { %v514_v47 = vpop.eup %513 }
 0x20c   : > { %v387_v49 = vmul.f32 %v514_v47, %v363_v25 }
 0x20e   : > { %v396_v51 = vmul.f32 %v479_v48, %v387_v49 }
 0x20f   : > { %v516_v52 = vpop.eup %515 }
 0x210   : > { %v518_v53 = vpop.eup %517  ;;  %v405_v54 = vadd.f32 %v480_v50, %v396_v51  ;;  %v389_v55 = vmul.f32 %v516_v52, %v365_v31 }
 0x211   : > { %v388_v56 = vmul.f32 %v518_v53, %v364_v32 }
 0x212   : > { %408 = vst.msk [vmem:[%s251_s26] sm:$0xff] %vm348_vm3, %v405_v54  ;;  %v398_v57 = vmul.f32 %v479_v48, %v389_v55 }
 0x213   : > { %v397_v58 = vmul.f32 %v479_v48, %v388_v56 }
 0x214   : > { %v407_v59 = vadd.f32 %v480_v50, %v398_v57 }
 0x215   : > { %v406_v60 = vadd.f32 %v480_v50, %v397_v58 }
 0x216   : > { %410 = vst.msk [vmem:[%s251_s26 + $0x10] sm:$0x1] %vm355_vm4, %v407_v59 }
 0x217   : > { %409 = vst.msk [vmem:[%s251_s26 + $0x8] sm:$0xff] %vm348_vm3, %v406_v60 }
 0x218 PF: > { %s16_s21 = sadd.s32 1, %s525_s21  }
 0x219   : > { %p13_p4 = scmp.ge.s32.totalorder %s16_s21, 4  }
 0x21b   :  { %15 = sbr.rel (!%p13_p4) target bundleno = 1 (0x1), region = 74 }

// kernel: vit_mim_forward.5
= control target key start
LH: loop header
LB: loop body
LE: loop exit
PB: predicated region body
PF: predicated region fallthrough
CT: control target
= control target key end

     0   :  { %s2030_s30 = smov 0   ;;  %s2353_s0 = inlined_call_operand.vmem [shape: f32[2,17,32], index: 0, kind: input, shape index: {}]   ;;  %s2354_s1 = inlined_call_operand.vmem [shape: bf16[32,96], index: 1, kind: input, shape index: {}]   ;;  %s2355_s2 = inlined_call_operand.vmem [shape: f32[1,96], index: 2, kind: input, shape index: {}]   ;;  %s2356_s3 = inlined_call_operand.vmem [shape: bf16[32,32], index: 3, kind: input, shape index: {}]   ;;  %s2357_s4 = inlined_call_operand.vmem [shape: f32[1,32], index: 4, kind: input, shape index: {}]   ;;  %s2358_s5 = inlined_call_operand.vmem [shape: bf16[32,128], index: 5, kind: input, shape index: {}]   ;;  %s2359_s6 = inlined_call_operand.vmem [shape: f32[1,128], index: 6, kind: input, shape index: {}]   ;;  %s2360_s7 = inlined_call_operand.vmem [shape: bf16[128,32], index: 7, kind: input, shape index: {}]   ;;  %s2361_s8 = inlined_call_operand.vmem [shape: f32[1,32], index: 8, kind: input, shape index: {}]   ;;  %s2362_s9 = inlined_call_operand.vmem [shape: f32[2,17,32], index: 9, kind: output, shape index: {}]  }
   0x1 LB: > { %s1607_s10 = sadd.s32 4294967295, %s1969_s30   ;;  %p1611_p0 = scmp.ge.s32.totalorder %s1969_s30, 1  ;;  %s1969_s30 = sphi %s2030_s30, %s19_s30  }
   0x2   : > { %p287_p1 = scmp.lt.s32.totalorder %s1969_s30, 3 }
   0x4   : > { %p288_p2 = pnand %p1611_p0, %p287_p1 }
   0x5   : > { %p323_p3 = scmp.lt.s32.totalorder (!%p288_p2), %s1607_s10, 1  ;;  %s1971_s21 = smov (!%p288_p2), 120  }
   0x6   : > { %291 = sbr.rel (%p288_p2) target bundleno = 2594 (0xa22), region = 56  ;;  %s1972_s22 = smov (!%p288_p2), 112  }
   0x7   : > { %s1973_s23 = smov (!%p288_p2), 96   ;;  %s1974_s24 = smov (!%p288_p2), 104  }
   0x8   : > { %s1975_s25 = smov (!%p288_p2), 64   ;;  %s1977_s26 = smov (!%p288_p2), 8  }
   0x9   : > { %s1978_s29 = smov (!%p288_p2), 16  }
   0xb   : > { %s2364_s10 = smov (!%p323_p3, %s1607_s10), 1  ;;  %vm337_vm0 = vcmask 261120   ;;  %vm344_vm1 = vcmask 253952   ;;  %v1877_v21 = vld [vmem:[%s2354_s1 + $0x8] sm:$0xff]   ;;  %v1878_v22 = vld [vmem:[%s2354_s1] sm:$0xff]   ;;  %vm502_vm2 = vcmask 64512  }
   0xc   : > { %s1829_s11 = smul.u32 24, %s2364_s10  ;;  %1713 = vmatprep.subr.bf16.mxu0 %v1877_v21  ;;  %v1614_v40 = vld [vmem:[%s2355_s2] ss:$0 sm:$0xff]  ;;  %vm768_vm3 = vcmask 131072   ;;  %vm761_vm4 = vcmask 138240   ;;  %vm914_vm5 = vcmask 1040384  }
   0xd   : > { %1714 = vmatpush3.bf16.msra.mxu0 %v1877_v21  ;;  %vm1193_vm6 = vcmask 130048   ;;  %vm1197_vm7 = vcmask 195584  }
   0xe   : > { %s327_s14 = scalar_lea.vmem %s2353_s0, %s1829_s11  ;;  %1715 = vmatprep.subr.bf16.mxu0 %v1878_v22 }
   0xf   : > { %v2046_v0 = vld [vmem:[%s327_s14] sm:$0xff]  ;;  %v2048_v1 = vld [vmem:[%s327_s14 + $0x10] sm:$0x1]  ;;  %v2050_v2 = vld [vmem:[%s327_s14 + $0x8] sm:$0xff]  ;;  %s1979_s14 = smov 24  }
  0x10   : > { %v338_v3 = vsel %vm337_vm0, %v2046_v0, 0.0  ;;  %v345_v4 = vsel %vm344_vm1, %v2048_v1, 0.0  ;;  %v341_v5 = vsel %vm337_vm0, %v2050_v2, 0.0 }
  0x11   : > { %339 = vadd.xlane.f32.xlu0 %v338_v3  ;;  %346 = vadd.xlane.f32.xlu1 %v345_v4 }
  0x12   : > { %1716 = vmatpush3.bf16.msra.mxu0 %v1878_v22 }
  0x15   : > { %342 = vadd.xlane.f32.xlu0 %v341_v5 }
  0x9a   : > { %v340_v6 = vpop.xlane.xlu0 %339  ;;  %v347_v7 = vpop.xlane.xlu1 %346 }
  0x9b   : > { %v349_v8 = vmul.f32 0.03125, %v340_v6  ;;  %v351_v9 = vmul.f32 0.03125, %v347_v7 }
  0x9d   : > { %v352_v10 = vsub.f32 %v2046_v0, %v349_v8  ;;  %v354_v11 = vsub.f32 %v2048_v1, %v351_v9 }
  0x9e   : > { %v343_v12 = vpop.xlane.xlu0 %342 }
  0x9f   : > { %v350_v13 = vmul.f32 0.03125, %v343_v12  ;;  %v355_v14 = vmul.f32 %v352_v10, %v352_v10  ;;  %v357_v15 = vmul.f32 %v354_v11, %v354_v11 }
  0xa1   : > { %v353_v16 = vsub.f32 %v2050_v2, %v350_v13  ;;  %v358_v17 = vsel %vm337_vm0, %v355_v14, 0.0  ;;  %v364_v18 = vsel %vm344_vm1, %v357_v15, 0.0 }
  0xa2   : > { %359 = vadd.xlane.f32.xlu1 %v358_v17 }
  0xa3   : > { %v356_v19 = vmul.f32 %v353_v16, %v353_v16 }
  0xa5   : > { %v361_v20 = vsel %vm337_vm0, %v356_v19, 0.0 }
  0xa6   : > { %365 = vadd.xlane.f32.xlu1 %v364_v18  ;;  %362 = vadd.xlane.f32.xlu0 %v361_v20 }
 0x12b   : > { %v360_v23 = vpop.xlane.xlu1 %359 }
 0x12c   : > { %v367_v24 = vmul.f32 0.03125, %v360_v23 }
 0x12e   : > { %v370_v25 = vadd.f32 1e-05, %v367_v24 }
 0x12f   : > { %v366_v26 = vpop.xlane.xlu1 %365  ;;  %v363_v27 = vpop.xlane.xlu0 %362 }
 0x130   : > { %v369_v28 = vmul.f32 0.03125, %v366_v26  ;;  %v368_v29 = vmul.f32 0.03125, %v363_v27  ;;  %1891 = vrsqrt.f32 %v370_v25 }
 0x132   : > { %v372_v30 = vadd.f32 1e-05, %v369_v28  ;;  %v371_v31 = vadd.f32 1e-05, %v368_v29 }
 0x134   : > { %1893 = vrsqrt.f32 %v372_v30 }
 0x135   : > { %1895 = vrsqrt.f32 %v371_v31 }
 0x13d   : > { %v1892_v32 = vpop.eup %1891 }
 0x13e   : > { %v376_v36 = vmul.f32 %v1892_v32, %v352_v10 }
 0x141   : > { %v1894_v33 = vpop.eup %1893 }
 0x142   : > { %v1896_v34 = vpop.eup %1895  ;;  %v378_v35 = vmul.f32 %v1894_v33, %v354_v11 }
 0x143   : > { %v377_v37 = vmul.f32 %v1896_v34, %v353_v16 }
 0x144   : > { %v380_v38 = vpack.c.bf16 %v378_v35, %v378_v35 }
 0x145   : > { %v379_v39 = vpack.c.bf16 %v377_v37, %v376_v36 }
 0x147   : > { %1717 = vmatprep.mubr.msk.bf16.mxu0 %vm337_vm0, %v379_v39 }
 0x148   : > { %1718 = vmatmul.mubr.msk.bf16.vlgmr.msra.gmra.mxu0 %vm337_vm0, %v380_v38 }
 0x208   : > { %v1719_v41 = vpop.f32.mrf.mxu0 }
 0x209   : > { %v453_v42 = vadd.f32 %v1719_v41, %v1614_v40 }
 0x20a   : > { %v444_v43 = vpop.f32.mrf.mxu0 }
 0x20b   : > { %465 = vrot.lane.b32.xlu0 %v453_v42, %s1971_s21  ;;  %v445_v46 = vadd.f32 %v1614_v40, %v444_v43  ;;  %v2079_v50 = vpack.c.bf16 %v453_v42, %v453_v42 }
 0x20c   : > { %v1720_v44 = vpop.f32.mrf.mxu0 }
 0x20e   : > { %v447_v45 = vpop.f32.mrf.mxu0 }
 0x20f   : > { %v448_v47 = vadd.f32 %v1614_v40, %v447_v45 }
 0x211   : > { %v1852_v48 = vpack.i.bf16 %v448_v47, %v445_v46  ;;  %v2075_v49 = vpack.c.bf16 %v448_v47, %v445_v46 }
 0x213   : > { %1853 = vrot.lane.b32.xlu0 %v1852_v48, %s1972_s22  ;;  %1848 = vrot.lane.b32.xlu1 %v1852_v48, %s1971_s21 }
 0x214   : > { %1725 = vmatprep.mubr.msk.bf16.mxu0 %vm502_vm2, %v2075_v49 }
 0x217   : > { %500 = vrot.lane.b32.xlu0 %v2079_v50, %s1973_s23  ;;  %474 = vrot.lane.b32.xlu1 %v453_v42, %s1972_s22 }
 0x21b   : > { %483 = vrot.lane.b32.xlu1 %v453_v42, %s1974_s24 }
 0x21f   : > { %1858 = vrot.lane.b32.xlu1 %v1852_v48, %s1974_s24 }
 0x223   : > { %498 = vrot.lane.b32.xlu1 %v2075_v49, %s1973_s23 }
 0x27d   : > { %v466_v51 = vpop.permute.xlu0 %465 }
 0x27e   : > { %v2085_v52 = vpack.c.bf16 %v466_v51, %v466_v51 }
 0x280   : > { %567 = vrot.lane.b32.xlu0 %v2085_v52, %s1973_s23 }
 0x285   : > { %v1854_v53 = vpop.permute.xlu0 %1853  ;;  %v1849_v54 = vpop.permute.xlu1 %1848 }
 0x286   : > { %v1856_v55 = vunpack.i.h.bf16 %v1854_v53  ;;  %v1855_v56 = vunpack.i.l.bf16 %v1854_v53  ;;  %v1851_v57 = vunpack.i.h.bf16 %v1849_v54  ;;  %v1850_v58 = vunpack.i.l.bf16 %v1849_v54 }
 0x288   : > { %v2089_v59 = vpack.c.bf16 %v1856_v55, %v1855_v56  ;;  %v2091_v60 = vpack.c.bf16 %v1851_v57, %v1850_v58 }
 0x289   : > { %v501_v61 = vpop.permute.xlu0 %500  ;;  %v475_v62 = vpop.permute.xlu1 %474 }
 0x28a   : > { %v513_v63 = vsel %vm502_vm2, %v501_v61, 0  ;;  %v2094_v3 = vpack.c.bf16 %v475_v62, %v475_v62  ;;  %1821 = vmatprep.subr.msk.bf16.mxu0 %vm502_vm2, %v501_v61  ;;  %1741 = vmatprep.mubr.msk.bf16.mxu1 %vm502_vm2, %v2089_v59 }
 0x28b   : > { %565 = vrot.lane.b32.xlu1 %v2091_v60, %s1973_s23  ;;  %1722 = vmatpush3.bf16.xpose.msra.mxu0 %v513_v63 }
 0x28c   : > { %633 = vrot.lane.b32.xlu0 %v2094_v3, %s1973_s23 }
 0x28d   : > { %v484_v4 = vpop.permute.xlu1 %483 }
 0x28e   : > { %v2103_v5 = vpack.c.bf16 %v484_v4, %v484_v4 }
 0x290   : > { %631 = vrot.lane.b32.xlu0 %v2089_v59, %s1973_s23  ;;  %699 = vrot.lane.b32.xlu1 %v2103_v5, %s1973_s23 }
 0x291   : > { %v1859_v6 = vpop.permute.xlu1 %1858 }
 0x292   : > { %v1861_v7 = vunpack.i.h.bf16 %v1859_v6  ;;  %v1860_v8 = vunpack.i.l.bf16 %v1859_v6 }
 0x294   : > { %v2109_v9 = vpack.c.bf16 %v1861_v7, %v1860_v8 }
 0x295   : > { %v499_v10 = vpop.permute.xlu1 %498 }
 0x296   : > { %v510_v11 = vsel %vm502_vm2, %v499_v10, 0  ;;  %697 = vrot.lane.b32.xlu1 %v2109_v9, %s1973_s23  ;;  %1822 = vmatprep.subr.msk.bf16.mxu0 %vm502_vm2, %v499_v10 }
 0x297   : > { %1724 = vmatpush3.bf16.xpose.msra.mxu0 %v510_v11 }
 0x29e   : > { %1726 = vmatmul.mubr.msk.bf16.vlgmr.msra.gmra.mxu0 %vm502_vm2, %v2079_v50 }
 0x29f   : > { %1733 = vmatprep.mubr.msk.bf16.mxu0 %vm502_vm2, %v2091_v60 }
 0x2f2   : > { %v568_v12 = vpop.permute.xlu0 %567 }
 0x2f3   : > { %v579_v13 = vsel %vm502_vm2, %v568_v12, 0  ;;  %1823 = vmatprep.subr.msk.bf16.mxu0 %vm502_vm2, %v568_v12 }
 0x2f4   : > { %1730 = vmatpush3.bf16.xpose.msra.mxu0 %v579_v13 }
 0x2fd   : > { %v566_v14 = vpop.permute.xlu1 %565 }
 0x2fe   : > { %v576_v15 = vsel %vm502_vm2, %v566_v14, 0  ;;  %1824 = vmatprep.subr.msk.bf16.mxu0 %vm502_vm2, %v566_v14  ;;  %v634_v16 = vpop.permute.xlu0 %633 }
 0x2ff   : > { %1732 = vmatpush3.bf16.xpose.msra.mxu0 %v576_v15  ;;  %1825 = vmatprep.subr.msk.bf16.mxu1 %vm502_vm2, %v634_v16  ;;  %v645_v17 = vsel %vm502_vm2, %v634_v16, 0 }
 0x300   : > { %1738 = vmatpush3.bf16.xpose.msra.mxu1 %v645_v17 }
 0x302   : > { %v632_v18 = vpop.permute.xlu0 %631  ;;  %v700_v19 = vpop.permute.xlu1 %699 }
 0x303   : > { %1826 = vmatprep.subr.msk.bf16.mxu1 %vm502_vm2, %v632_v18  ;;  %1827 = vmatprep.subr.msk.bf16.mxu0 %vm502_vm2, %v700_v19  ;;  %v711_v20 = vsel %vm502_vm2, %v700_v19, 0  ;;  %v642_v21 = vsel %vm502_vm2, %v632_v18, 0 }
 0x306   : > { %1734 = vmatmul.mubr.msk.bf16.vlgmr.msra.gmra.mxu0 %vm502_vm2, %v2085_v52 }
 0x307   : > { %1746 = vmatpush3.bf16.xpose.msra.mxu0 %v711_v20  ;;  %1749 = vmatprep.mubr.msk.bf16.mxu0 %vm502_vm2, %v2109_v9 }
 0x308   : > { %1740 = vmatpush3.bf16.xpose.msra.mxu1 %v642_v21  ;;  %v698_v22 = vpop.permute.xlu1 %697 }
 0x309   : > { %1828 = vmatprep.subr.msk.bf16.mxu0 %vm502_vm2, %v698_v22  ;;  %v708_v23 = vsel %vm502_vm2, %v698_v22, 0 }
 0x30f   : > { %1748 = vmatpush3.bf16.xpose.msra.mxu0 %v708_v23  ;;  %1742 = vmatmul.mubr.msk.bf16.vlgmr.msra.gmra.mxu1 %vm502_vm2, %v2094_v3 }
 0x316   : > { %1750 = vmatmul.mubr.msk.bf16.vlgmr.msra.gmra.mxu0 %vm502_vm2, %v2103_v5 }
 0x35e   : > { %v1727_v24 = vpop.f32.mrf.mxu0 }
 0x35f   : > { %v769_v25 = vsel %vm768_vm3, %v1727_v24, -inf }
 0x360   : > { %770 = vmax.xlane.f32.xlu0 %v769_v25  ;;  %v549_v26 = vpop.f32.mrf.mxu0 }
 0x361   : > { %v762_v28 = vsel %vm761_vm4, %v549_v26, -inf }
 0x362   : > { %v1728_v27 = vpop.f32.mrf.mxu0 }
 0x364   : > { %763 = vmax.xlane.f32.xlu0 %v762_v28  ;;  %v552_v29 = vpop.f32.mrf.mxu0 }
 0x365   : > { %v765_v30 = vsel %vm761_vm4, %v552_v29, -inf }
 0x366   : > { %766 = vmax.xlane.f32.xlu1 %v765_v30 }
 0x3c6   : > { %v1735_v31 = vpop.f32.mrf.mxu0 }
 0x3c7   : > { %v778_v32 = vsel %vm768_vm3, %v1735_v31, -inf }
 0x3c8   : > { %779 = vmax.xlane.f32.xlu1 %v778_v32  ;;  %v615_v33 = vpop.f32.mrf.mxu0 }
 0x3c9   : > { %v772_v34 = vsel %vm761_vm4, %v615_v33, -inf }
 0x3ca   : > { %773 = vmax.xlane.f32.xlu0 %v772_v34  ;;  %v1736_v35 = vpop.f32.mrf.mxu0 }
 0x3cb   : > { %v1976_v35 = vmov 0  }
 0x3cc   : > { %v2150_v39 = vpop.f32.mrf.mxu0 }
 0x3cd   : > { %v775_v44 = vsel %vm761_vm4, %v2150_v39, -inf }
 0x3cf   : > { %v2144_v36 = vpop.f32.mrf.mxu1 }
 0x3d0   : > { %v787_v47 = vsel %vm768_vm3, %v2144_v36, -inf }
 0x3d1   : > { %v2146_v37 = vpop.f32.mrf.mxu1 }
 0x3d2   : > { %v781_v38 = vsel %vm761_vm4, %v2146_v37, -inf }
 0x3d3   : > { %v1744_v40 = vpop.f32.mrf.mxu1  ;;  %782 = vmax.xlane.f32.xlu0 %v781_v38 }
 0x3d5   : > { %v684_v41 = vpop.f32.mrf.mxu1 }
 0x3d6   : > { %v2152_v42 = vpop.f32.mrf.mxu0  ;;  %v784_v43 = vsel %vm761_vm4, %v684_v41, -inf }
 0x3d7   : > { %785 = vmax.xlane.f32.xlu1 %v784_v43  ;;  %776 = vmax.xlane.f32.xlu0 %v775_v44  ;;  %v796_v53 = vsel %vm768_vm3, %v2152_v42, -inf }
 0x3d8   : > { %v2157_v45 = vpop.f32.mrf.mxu0 }
 0x3d9   : > { %v790_v48 = vsel %vm761_vm4, %v2157_v45, -inf }
 0x3da   : > { %v1752_v46 = vpop.f32.mrf.mxu0 }
 0x3db   : > { %788 = vmax.xlane.f32.xlu0 %v787_v47  ;;  %791 = vmax.xlane.f32.xlu1 %v790_v48 }
 0x3dc   : > { %v2163_v51 = vpop.f32.mrf.mxu0 }
 0x3dd   : > { %v793_v54 = vsel %vm761_vm4, %v2163_v51, -inf }
 0x3df   : > { %797 = vmax.xlane.f32.xlu1 %v796_v53  ;;  %794 = vmax.xlane.f32.xlu0 %v793_v54 }
 0x3e9   : > { %v771_v55 = vpop.xlane.xlu0 %770 }
 0x3ea   : > { %v801_v56 = vsub.f32 %v1727_v24, %v771_v55 }
 0x3ec   : > { %v815_v58 = vmul.f32 1.442695, %v801_v56 }
 0x3ed   : > { %v764_v57 = vpop.xlane.xlu0 %763 }
 0x3ee   : > { %1897 = vpow2.f32 %v815_v58 }
 0x3ef   : > { %v767_v61 = vpop.xlane.xlu1 %766 }
 0x3f0   : > { %970 = vrot.lane.b32.xlu1 %v2085_v52, %s1975_s25  ;;  %v799_v52 = vsub.f32 %v549_v26, %v764_v57  ;;  %v800_v62 = vsub.f32 %v552_v29, %v767_v61 }
 0x3f4   : > { %903 = vrot.lane.b32.xlu1 %v2075_v49, %s1975_s25  ;;  %v811_v49 = vmul.f32 1.442695, %v799_v52 }
 0x3f5   : > { %905 = vrot.lane.b32.xlu0 %v2079_v50, %s1975_s25  ;;  %v813_v50 = vmul.f32 1.442695, %v800_v62 }
 0x3f6   : > { %1899 = vpow2.f32 %v811_v49 }
 0x3f7   : > { %1901 = vpow2.f32 %v813_v50 }
 0x3f8   : > { %968 = vrot.lane.b32.xlu1 %v2091_v60, %s1975_s25 }
 0x3f9   : > { %1032 = vrot.lane.b32.xlu0 %v2094_v3, %s1975_s25 }
 0x3fb   : > { %v2181_v63 = vpop.eup %1897 }
 0x3fc   : > { %1094 = vrot.lane.b32.xlu1 %v2103_v5, %s1975_s25  ;;  %v841_v60 = vsel %vm768_vm3, %v2181_v63, 0.0 }
 0x403   : > { %v2185_v3 = vpop.eup %1899 }
 0x404   : > { %v835_v4 = vsel %vm761_vm4, %v2185_v3, 0.0  ;;  %v2189_v5 = vpop.eup %1901 }
 0x405   : > { %v838_v6 = vsel %vm761_vm4, %v2189_v5, 0.0 }
 0x418   : > { %842 = vadd.xlane.f32.xlu0 %v841_v60 }
 0x41c   : > { %836 = vadd.xlane.f32.xlu0 %v835_v4 }
 0x420   : > { %839 = vadd.xlane.f32.xlu1 %v838_v6 }
 0x451   : > { %v780_v7 = vpop.xlane.xlu1 %779 }
 0x452   : > { %v804_v8 = vsub.f32 %v1735_v31, %v780_v7 }
 0x453   : > { %v774_v10 = vpop.xlane.xlu0 %773 }
 0x454   : > { %v821_v11 = vmul.f32 1.442695, %v804_v8  ;;  %v802_v12 = vsub.f32 %v615_v33, %v774_v10 }
 0x456   : > { %1903 = vpow2.f32 %v821_v11  ;;  %v817_v13 = vmul.f32 1.442695, %v802_v12 }
 0x458   : > { %1905 = vpow2.f32 %v817_v13 }
 0x45c   : > { %v783_v14 = vpop.xlane.xlu0 %782 }
 0x45d   : > { %v805_v19 = vsub.f32 %v2146_v37, %v783_v14 }
 0x45f   : > { %v823_v27 = vmul.f32 1.442695, %v805_v19 }
 0x460   : > { %v786_v15 = vpop.xlane.xlu1 %785  ;;  %v777_v16 = vpop.xlane.xlu0 %776 }
 0x461   : > { %v806_v17 = vsub.f32 %v684_v41, %v786_v15  ;;  %v803_v26 = vsub.f32 %v2150_v39, %v777_v16 }
 0x463   : > { %v2193_v18 = vpop.eup %1903  ;;  %v825_v20 = vmul.f32 1.442695, %v806_v17  ;;  %v819_v34 = vmul.f32 1.442695, %v803_v26 }
 0x464   : > { %v789_v21 = vpop.xlane.xlu0 %788  ;;  %v850_v22 = vsel %vm768_vm3, %v2193_v18, 0.0  ;;  %v792_v23 = vpop.xlane.xlu1 %791 }
 0x465   : > { %v2198_v24 = vpop.eup %1905  ;;  %1907 = vpow2.f32 %v825_v20  ;;  %v807_v25 = vsub.f32 %v2144_v36, %v789_v21  ;;  %851 = vadd.xlane.f32.xlu1 %v850_v22  ;;  %v808_v29 = vsub.f32 %v2157_v45, %v792_v23  ;;  %v916_v36 = vsel %vm914_vm5, 65535, %v1976_v35 }
 0x466   : > { %v844_v30 = vsel %vm761_vm4, %v2198_v24, 0.0 }
 0x467   : > { %v827_v28 = vmul.f32 1.442695, %v807_v25  ;;  %v829_v37 = vmul.f32 1.442695, %v808_v29 }
 0x468   : > { %v798_v31 = vpop.xlane.xlu1 %797  ;;  %v795_v32 = vpop.xlane.xlu0 %794 }
 0x469   : > { %1909 = vpow2.f32 %v827_v28  ;;  %845 = vadd.xlane.f32.xlu1 %v844_v30  ;;  %v810_v33 = vsub.f32 %v2152_v42, %v798_v31  ;;  %v809_v39 = vsub.f32 %v2163_v51, %v795_v32 }
 0x46a   : > { %1911 = vpow2.f32 %v823_v27 }
 0x46b   : > { %v833_v38 = vmul.f32 1.442695, %v810_v33  ;;  %v831_v45 = vmul.f32 1.442695, %v809_v39 }
 0x46c   : > { %v971_v40 = vpop.permute.xlu1 %970  ;;  %v906_v41 = vpop.permute.xlu0 %905 }
 0x46d   : > { %1913 = vpow2.f32 %v833_v38  ;;  %v980_v43 = vand.u32 %v971_v40, %v916_v36  ;;  %v918_v44 = vand.u32 %v916_v36, %v906_v41 }
 0x46e   : > { %1915 = vpow2.f32 %v819_v34 }
 0x46f   : > { %1917 = vpow2.f32 %v829_v37  ;;  %1753 = vmatprep.subr.bf16.mxu1 %v918_v44  ;;  %1761 = vmatprep.subr.bf16.mxu0 %v980_v43 }
 0x470   : > { %1762 = vmatpush3.bf16.msra.mxu0 %v980_v43  ;;  %v904_v42 = vpop.permute.xlu1 %903  ;;  %1754 = vmatpush3.bf16.msra.mxu1 %v918_v44  ;;  %v1033_v46 = vpop.permute.xlu0 %1032  ;;  %1919 = vpow2.f32 %v831_v45 }
 0x471   : > { %1755 = vmatprep.subr.bf16.mxu1 %v904_v42  ;;  %v1042_v48 = vand.u32 %v1033_v46, %v916_v36 }
 0x472   : > { %v2207_v47 = vpop.eup %1907 }
 0x473   : > { %v856_v51 = vsel %vm761_vm4, %v2207_v47, 0.0 }
 0x474   : > { %857 = vadd.xlane.f32.xlu1 %v856_v51  ;;  %v969_v53 = vpop.permute.xlu1 %968  ;;  %1756 = vmatpush3.bf16.msra.mxu1 %v904_v42 }
 0x475   : > { %1763 = vmatprep.subr.bf16.mxu0 %v969_v53  ;;  %1769 = vmatprep.subr.bf16.mxu1 %v1042_v48 }
 0x476   : > { %v2211_v54 = vpop.eup %1909  ;;  %1764 = vmatpush3.bf16.msra.mxu0 %v969_v53 }
 0x477   : > { %v859_v55 = vsel %vm768_vm3, %v2211_v54, 0.0  ;;  %v2215_v56 = vpop.eup %1911 }
 0x478   : > { %v1095_v57 = vpop.permute.xlu1 %1094  ;;  %860 = vadd.xlane.f32.xlu0 %v859_v55  ;;  %v853_v62 = vsel %vm761_vm4, %v2215_v56, 0.0 }
 0x479   : > { %v2217_v58 = vand.u32 %v1095_v57, %v916_v36 }
 0x47a   : > { %v2219_v52 = vpop.eup %1913 }
 0x47b   : > { %v2221_v61 = vpop.eup %1915  ;;  %1777 = vmatprep.subr.bf16.mxu0 %v2217_v58  ;;  %v868_v49 = vsel %vm768_vm3, %v2219_v52, 0.0 }
 0x47c   : > { %v2228_v50 = vpop.eup %1917  ;;  %869 = vadd.xlane.f32.xlu1 %v868_v49  ;;  %854 = vadd.xlane.f32.xlu0 %v853_v62  ;;  %v847_v4 = vsel %vm761_vm4, %v2221_v61, 0.0 }
 0x47d   : > { %v862_v60 = vsel %vm761_vm4, %v2228_v50, 0.0  ;;  %v2234_v6 = vpop.eup %1919 }
 0x47e   : > { %v865_v7 = vsel %vm761_vm4, %v2234_v6, 0.0 }
 0x480   : > { %863 = vadd.xlane.f32.xlu1 %v862_v60  ;;  %848 = vadd.xlane.f32.xlu0 %v847_v4  ;;  %v1880_v60 = vld [vmem:[%s2356_s3] sm:$0xff]  }
 0x484   : > { %866 = vadd.xlane.f32.xlu0 %v865_v7 }
 0x491   : > { %1092 = vrot.lane.b32.xlu1 %v2109_v9, %s1975_s25 }
 0x49a   : > { %1030 = vrot.lane.b32.xlu0 %v2089_v59, %s1975_s25  ;;  %s332_s25 = scalar_lea.vmem %s2362_s9, %s1829_s11 }
 0x4a1   : > { %v843_v8 = vpop.xlane.xlu0 %842 }
 0x4a2   : > { %1921 = vrcp.f32 %v843_v8 }
 0x4a5   : > { %v837_v10 = vpop.xlane.xlu0 %836 }
 0x4a6   : > { %1923 = vrcp.f32 %v837_v10 }
 0x4a9   : > { %v840_v11 = vpop.xlane.xlu1 %839 }
 0x4aa   : > { %1925 = vrcp.f32 %v840_v11 }
 0x4af   : > { %v1922_v12 = vpop.eup %1921 }
 0x4b0   : > { %v885_v15 = vmul.f32 %v1922_v12, %v2181_v63 }
 0x4b2   : > { %v896_v9 = vpack.c.bf16 %v885_v15, %v885_v15 }
 0x4b3   : > { %v1924_v13 = vpop.eup %1923 }
 0x4b4   : > { %v883_v16 = vmul.f32 %v1924_v13, %v2185_v3 }
 0x4b7   : > { %v1926_v14 = vpop.eup %1925 }
 0x4b8   : > { %v884_v17 = vmul.f32 %v1926_v14, %v2189_v5 }
 0x4ba   : > { %v895_v19 = vpack.c.bf16 %v884_v17, %v883_v16 }
 0x4bc   : > { %1757 = vmatprep.mubr.msk.bf16.mxu1 %vm761_vm4, %v895_v19 }
 0x4bd   : > { %1758 = vmatmul.mubr.msk.bf16.vlgmr.msra.gmra.mxu1 %vm761_vm4, %v896_v9 }
 0x4be   : > { %1770 = vmatpush3.bf16.msra.mxu1 %v1042_v48 }
 0x4ee   : > { %v852_v59 = vpop.xlane.xlu1 %851 }
 0x4f2   : > { %v846_v20 = vpop.xlane.xlu1 %845 }
 0x4fd   : > { %v858_v21 = vpop.xlane.xlu1 %857 }
 0x501   : > { %v861_v22 = vpop.xlane.xlu0 %860 }
 0x502   : > { %1927 = vrcp.f32 %v861_v22 }
 0x503   : > { %1929 = vrcp.f32 %v858_v21 }
 0x505   : > { %v870_v23 = vpop.xlane.xlu1 %869  ;;  %v855_v25 = vpop.xlane.xlu0 %854 }
 0x506   : > { %1931 = vrcp.f32 %v855_v25 }
 0x507   : > { %1933 = vrcp.f32 %v852_v59 }
 0x508   : > { %1935 = vrcp.f32 %v846_v20 }
 0x509   : > { %v864_v63 = vpop.xlane.xlu1 %863  ;;  %v849_v3 = vpop.xlane.xlu0 %848 }
 0x50a   : > { %1937 = vrcp.f32 %v849_v3 }
 0x50b   : > { %1939 = vrcp.f32 %v864_v63 }
 0x50d   : > { %v867_v5 = vpop.xlane.xlu0 %866  ;;  %v1093_v48 = vpop.permute.xlu1 %1092 }
 0x50e   : > { %1941 = vrcp.f32 %v867_v5 }
 0x50f   : > { %1943 = vrcp.f32 %v870_v23  ;;  %v1928_v26 = vpop.eup %1927 }
 0x510   : > { %v1930_v28 = vpop.eup %1929  ;;  %v891_v30 = vmul.f32 %v1928_v26, %v2211_v54 }
 0x511   : > { %v1031_v27 = vpop.permute.xlu0 %1030  ;;  %v890_v33 = vmul.f32 %v1930_v28, %v2207_v47 }
 0x512   : > { %1771 = vmatprep.subr.bf16.mxu1 %v1031_v27  ;;  %v900_v37 = vpack.c.bf16 %v891_v30, %v891_v30 }
 0x513   : > { %1772 = vmatpush3.bf16.msra.mxu1 %v1031_v27  ;;  %v1932_v29 = vpop.eup %1931 }
 0x514   : > { %v1934_v31 = vpop.eup %1933  ;;  %v889_v32 = vmul.f32 %v1932_v29, %v2215_v56 }
 0x515   : > { %v1936_v34 = vpop.eup %1935  ;;  %v888_v38 = vmul.f32 %v1934_v31, %v2193_v18 }
 0x516   : > { %v899_v35 = vpack.c.bf16 %v890_v33, %v889_v32  ;;  %v886_v40 = vmul.f32 %v1936_v34, %v2198_v24 }
 0x517   : > { %v1938_v36 = vpop.eup %1937  ;;  %v898_v45 = vpack.c.bf16 %v888_v38, %v888_v38 }
 0x518   : > { %v1940_v39 = vpop.eup %1939  ;;  %1773 = vmatprep.mubr.msk.bf16.mxu1 %vm761_vm4, %v899_v35  ;;  %v887_v41 = vmul.f32 %v1938_v36, %v2221_v61  ;;  %v1635_v36 = vld [vmem:[%s2357_s4] ss:$0 sm:$0xff] }
 0x519   : > { %1774 = vmatmul.mubr.msk.bf16.vlgmr.msra.gmra.mxu1 %vm761_vm4, %v900_v37  ;;  %v892_v42 = vmul.f32 %v1940_v39, %v2228_v50 }
 0x51a   : > { %v897_v44 = vpack.c.bf16 %v887_v41, %v886_v40 }
 0x51b   : > { %v1942_v43 = vpop.eup %1941 }
 0x51c   : > { %v893_v46 = vmul.f32 %v1942_v43, %v2234_v6  ;;  %v1944_v47 = vpop.eup %1943  ;;  %1765 = vmatprep.mubr.msk.bf16.mxu0 %vm761_vm4, %v897_v44 }
 0x51d   : > { %1766 = vmatmul.mubr.msk.bf16.vlgmr.msra.gmra.mxu0 %vm761_vm4, %v898_v45  ;;  %v894_v24 = vmul.f32 %v1944_v47, %v2219_v52 }
 0x51e   : > { %v901_v18 = vpack.c.bf16 %v893_v46, %v892_v42  ;;  %1778 = vmatpush3.bf16.msra.mxu0 %v2217_v58  ;;  %v1879_v58 = vld [vmem:[%s2356_s3 + $0x8] sm:$0xff]  }
 0x51f   : > { %1779 = vmatprep.subr.bf16.mxu0 %v1093_v48  ;;  %v902_v51 = vpack.c.bf16 %v894_v24, %v894_v24  ;;  %1785 = vmatprep.subr.bf16.mxu1 %v1879_v58 }
 0x520   : > { %1781 = vmatprep.mubr.msk.bf16.mxu0 %vm761_vm4, %v901_v18  ;;  %1786 = vmatpush3.bf16.msra.mxu1 %v1879_v58 }
 0x521   : > { %1787 = vmatprep.subr.bf16.mxu1 %v1880_v60 }
 0x522   : > { %1780 = vmatpush3.bf16.msra.mxu0 %v1093_v48 }
 0x524   : > { %1788 = vmatpush3.bf16.msra.mxu1 %v1880_v60 }
 0x525   : > { %1782 = vmatmul.mubr.msk.bf16.vlgmr.msra.gmra.mxu0 %vm761_vm4, %v902_v51 }
 0x57d   : > { %v1759_v53 = vpop.f32.mrf.mxu1 }
 0x57f   : > { %v954_v54 = vpop.f32.mrf.mxu1 }
 0x581   : > { %v1760_v55 = vpop.f32.mrf.mxu1 }
 0x583   : > { %v957_v56 = vpop.f32.mrf.mxu1 }
 0x5d9   : > { %v1775_v57 = vpop.f32.mrf.mxu1 }
 0x5db   : > { %v1078_v61 = vpop.f32.mrf.mxu1 }
 0x5dd   : > { %v1767_v49 = vpop.f32.mrf.mxu0  ;;  %v1776_v62 = vpop.f32.mrf.mxu1 }
 0x5de   : > { %1161 = vrot.lane.b32.xlu1 %v1767_v49, %s1977_s26 }
 0x5df   : > { %v1016_v50 = vpop.f32.mrf.mxu0  ;;  %v1081_v7 = vpop.f32.mrf.mxu1 }
 0x5e0   : > { %v1867_v11 = vpack.i.bf16 %v1081_v7, %v1078_v61 }
 0x5e1   : > { %v1768_v52 = vpop.f32.mrf.mxu0 }
 0x5e2   : > { %1173 = vrot.lane.b32.xlu1 %v1775_v57, %s1978_s29  ;;  %v1882_v52 = vld [vmem:[%s2358_s5] sm:$0xff]  }
 0x5e3   : > { %v1019_v4 = vpop.f32.mrf.mxu0 }
 0x5e4   : > { %v1862_v6 = vpack.i.bf16 %v1019_v4, %v1016_v50  ;;  %v1881_v50 = vld [vmem:[%s2358_s5 + $0x8] sm:$0xff]  }
 0x5e5   : > { %v1783_v8 = vpop.f32.mrf.mxu0  ;;  %1793 = vmatprep.subr.bf16.mxu0 %v1881_v50 }
 0x5e6   : > { %1863 = vrot.lane.b32.xlu0 %v1862_v6, %s1977_s26  ;;  %1185 = vrot.lane.b32.xlu1 %v1783_v8, %s1979_s14 }
 0x5e7   : > { %v1140_v10 = vpop.f32.mrf.mxu0  ;;  %1794 = vmatpush3.bf16.msra.mxu0 %v1881_v50 }
 0x5e8   : > { %1795 = vmatprep.subr.bf16.mxu0 %v1882_v52 }
 0x5e9   : > { %v1784_v12 = vpop.f32.mrf.mxu0 }
 0x5ea   : > { %1868 = vrot.lane.b32.xlu0 %v1867_v11, %s1978_s29 }
 0x5eb   : > { %v1143_v13 = vpop.f32.mrf.mxu0  ;;  %1796 = vmatpush3.bf16.msra.mxu0 %v1882_v52 }
 0x5ec   : > { %v1872_v14 = vpack.i.bf16 %v1143_v13, %v1140_v10 }
 0x5ee   : > { %1873 = vrot.lane.b32.xlu0 %v1872_v14, %s1979_s14 }
 0x650   : > { %v1162_v15 = vpop.permute.xlu1 %1161 }
 0x651   : > { %v1192_v22 = vsel %vm502_vm2, %v1759_v53, %v1162_v15 }
 0x654   : > { %v1174_v17 = vpop.permute.xlu1 %1173 }
 0x655   : > { %v1196_v25 = vsel %vm1193_vm6, %v1192_v22, %v1174_v17  ;;  %v1884_v22 = vld [vmem:[%s2360_s7 + $0x30] sm:$0xff]  }
 0x658   : > { %v1864_v16 = vpop.permute.xlu0 %1863  ;;  %v1186_v23 = vpop.permute.xlu1 %1185 }
 0x659   : > { %v1866_v9 = vunpack.i.h.bf16 %v1864_v16  ;;  %v1865_v59 = vunpack.i.l.bf16 %v1864_v16  ;;  %v1200_v28 = vsel %vm1197_vm7, %v1196_v25, %v1186_v23  ;;  %v1885_v23 = vld [vmem:[%s2360_s7 + $0x28] sm:$0xff]   ;;  %v1886_v25 = vld [vmem:[%s2360_s7 + $0x20] sm:$0xff]  }
 0x65a   : > { %v1202_v34 = vpack.c.bf16 %v1200_v28, %v1200_v28 }
 0x65b   : > { %v1191_v3 = vsel %vm502_vm2, %v957_v56, %v1866_v9  ;;  %v1190_v5 = vsel %vm502_vm2, %v954_v54, %v1865_v59 }
 0x65c   : > { %v1869_v19 = vpop.permute.xlu0 %1868 }
 0x65d   : > { %v1871_v20 = vunpack.i.h.bf16 %v1869_v19  ;;  %v1870_v21 = vunpack.i.l.bf16 %v1869_v19 }
 0x65f   : > { %v1194_v29 = vsel %vm1193_vm6, %v1190_v5, %v1870_v21  ;;  %v1195_v30 = vsel %vm1193_vm6, %v1191_v3, %v1871_v20  ;;  %v1883_v21 = vld [vmem:[%s2360_s7 + $0x38] sm:$0xff]   ;;  %v1888_v3 = vld [vmem:[%s2360_s7 + $0x10] sm:$0xff]   ;;  %v1889_v5 = vld [vmem:[%s2360_s7 + $0x8] sm:$0xff]  }
 0x660   : > { %v1874_v63 = vpop.permute.xlu0 %1873  ;;  %1801 = vmatprep.subr.bf16.mxu1 %v1883_v21 }
 0x661   : > { %v1876_v26 = vunpack.i.h.bf16 %v1874_v63  ;;  %v1875_v27 = vunpack.i.l.bf16 %v1874_v63  ;;  %v1887_v63 = vld [vmem:[%s2360_s7 + $0x18] sm:$0xff]  }
 0x663   : > { %v1198_v31 = vsel %vm1197_vm7, %v1194_v29, %v1875_v27  ;;  %v1199_v32 = vsel %vm1197_vm7, %v1195_v30, %v1876_v26  ;;  %v1890_v26 = vld [vmem:[%s2360_s7] sm:$0xff]  }
 0x664   : > { %v1201_v33 = vpack.c.bf16 %v1199_v32, %v1198_v31  ;;  %v1640_v27 = vld [vmem:[%s2359_s6] ss:$0 sm:$0xff] }
 0x666   : > { %1789 = vmatprep.mubr.msk.bf16.mxu1 %vm337_vm0, %v1201_v33 }
 0x667   : > { %1790 = vmatmul.mubr.msk.bf16.vlgmr.msra.gmra.mxu1 %vm337_vm0, %v1202_v34 }
 0x668   : > { %1802 = vmatpush3.bf16.msra.mxu1 %v1883_v21 }
 0x669   : > { %1803 = vmatprep.subr.bf16.mxu1 %v1884_v22 }
 0x66c   : > { %1804 = vmatpush3.bf16.msra.mxu1 %v1884_v22 }
 0x66d   : > { %1805 = vmatprep.subr.bf16.mxu1 %v1885_v23 }
 0x670   : > { %1806 = vmatpush3.bf16.msra.mxu1 %v1885_v23 }
 0x671   : > { %1807 = vmatprep.subr.bf16.mxu1 %v1886_v25 }
 0x674   : > { %1808 = vmatpush3.bf16.msra.mxu1 %v1886_v25 }
 0x675   : > { %1809 = vmatprep.subr.bf16.mxu1 %v1887_v63 }
 0x678   : > { %1810 = vmatpush3.bf16.msra.mxu1 %v1887_v63 }
 0x679   : > { %1811 = vmatprep.subr.bf16.mxu1 %v1888_v3 }
 0x67c   : > { %1812 = vmatpush3.bf16.msra.mxu1 %v1888_v3 }
 0x67d   : > { %1813 = vmatprep.subr.bf16.mxu1 %v1889_v5 }
 0x680   : > { %1814 = vmatpush3.bf16.msra.mxu1 %v1889_v5 }
 0x681   : > { %1815 = vmatprep.subr.bf16.mxu1 %v1890_v26 }
 0x684   : > { %1816 = vmatpush3.bf16.msra.mxu1 %v1890_v26 }
 0x727   : > { %v1791_v35 = vpop.f32.mrf.mxu1 }
 0x728   : > { %v1275_v38 = vadd.f32 %v1791_v35, %v1635_v36 }
 0x729   : > { %v1266_v37 = vpop.f32.mrf.mxu1 }
 0x72a   : > { %v1267_v39 = vadd.f32 %v1635_v36, %v1266_v37  ;;  %v2284_v44 = vadd.f32 %v1275_v38, %v2048_v1 }
 0x72b   : > { %v1792_v40 = vpop.f32.mrf.mxu1 }
 0x72c   : > { %v2281_v41 = vadd.f32 %v1267_v39, %v2046_v0  ;;  %v1289_v18 = vsel %vm344_vm1, %v2284_v44, 0.0 }
 0x72d   : > { %v1269_v43 = vpop.f32.mrf.mxu1 }
 0x72e   : > { %v1270_v45 = vadd.f32 %v1635_v36, %v1269_v43  ;;  %v1283_v42 = vsel %vm337_vm0, %v2281_v41, 0.0 }
 0x72f   : > { %1284 = vadd.xlane.f32.xlu0 %v1283_v42 }
 0x730   : > { %v2289_v46 = vadd.f32 %v1270_v45, %v2050_v2 }
 0x732   : > { %v1286_v47 = vsel %vm337_vm0, %v2289_v46, 0.0 }
 0x733   : > { %1287 = vadd.xlane.f32.xlu1 %v1286_v47  ;;  %1290 = vadd.xlane.f32.xlu0 %v1289_v18 }
 0x7b8   : > { %v1285_v0 = vpop.xlane.xlu0 %1284 }
 0x7b9   : > { %v1292_v48 = vmul.f32 0.03125, %v1285_v0 }
 0x7bb   : > { %v1295_v1 = vsub.f32 %v2281_v41, %v1292_v48 }
 0x7bc   : > { %v1288_v24 = vpop.xlane.xlu1 %1287  ;;  %v1291_v51 = vpop.xlane.xlu0 %1290 }
 0x7bd   : > { %v1293_v53 = vmul.f32 0.03125, %v1288_v24  ;;  %v1294_v54 = vmul.f32 0.03125, %v1291_v51  ;;  %v1298_v55 = vmul.f32 %v1295_v1, %v1295_v1 }
 0x7bf   : > { %v1296_v2 = vsub.f32 %v2289_v46, %v1293_v53  ;;  %v1297_v56 = vsub.f32 %v2284_v44, %v1294_v54  ;;  %v1301_v57 = vsel %vm337_vm0, %v1298_v55, 0.0 }
 0x7c0   : > { %1302 = vadd.xlane.f32.xlu0 %v1301_v57 }
 0x7c1   : > { %v1299_v61 = vmul.f32 %v1296_v2, %v1296_v2  ;;  %v1300_v49 = vmul.f32 %v1297_v56, %v1297_v56 }
 0x7c3   : > { %v1304_v62 = vsel %vm337_vm0, %v1299_v61, 0.0  ;;  %v1307_v58 = vsel %vm344_vm1, %v1300_v49, 0.0 }
 0x7c4   : > { %1305 = vadd.xlane.f32.xlu0 %v1304_v62  ;;  %1308 = vadd.xlane.f32.xlu1 %v1307_v58 }
 0x849   : > { %v1303_v60 = vpop.xlane.xlu0 %1302 }
 0x84a   : > { %v1310_v4 = vmul.f32 0.03125, %v1303_v60 }
 0x84c   : > { %v1313_v6 = vadd.f32 1e-05, %v1310_v4 }
 0x84d   : > { %v1309_v7 = vpop.xlane.xlu1 %1308  ;;  %v1306_v8 = vpop.xlane.xlu0 %1305 }
 0x84e   : > { %v1312_v10 = vmul.f32 0.03125, %v1309_v7  ;;  %v1311_v11 = vmul.f32 0.03125, %v1306_v8  ;;  %1945 = vrsqrt.f32 %v1313_v6 }
 0x850   : > { %v1315_v12 = vadd.f32 1e-05, %v1312_v10  ;;  %v1314_v13 = vadd.f32 1e-05, %v1311_v11 }
 0x852   : > { %1947 = vrsqrt.f32 %v1315_v12 }
 0x853   : > { %1949 = vrsqrt.f32 %v1314_v13 }
 0x85b   : > { %v1946_v14 = vpop.eup %1945 }
 0x85c   : > { %v1319_v19 = vmul.f32 %v1946_v14, %v1295_v1 }
 0x85f   : > { %v1948_v15 = vpop.eup %1947 }
 0x860   : > { %v1950_v16 = vpop.eup %1949  ;;  %v1321_v17 = vmul.f32 %v1948_v15, %v1297_v56  ;;  %v1648_v56 = vld [vmem:[%s2361_s8] ss:$0 sm:$0xff] }
 0x861   : > { %v1320_v9 = vmul.f32 %v1950_v16, %v1296_v2 }
 0x862   : > { %v1323_v59 = vpack.c.bf16 %v1321_v17, %v1321_v17 }
 0x863   : > { %v1322_v20 = vpack.c.bf16 %v1320_v9, %v1319_v19 }
 0x865   : > { %1797 = vmatprep.mubr.msk.bf16.mxu0 %vm337_vm0, %v1322_v20 }
 0x866   : > { %1798 = vmatmul.mubr.msk.bf16.vlgmr.msra.gmra.mxu0 %vm337_vm0, %v1323_v59 }
 0x926   : > { %v1799_v28 = vpop.f32.mrf.mxu0 }
 0x927   : > { %v1396_v29 = vadd.f32 %v1799_v28, %v1640_v27 }
 0x928   : > { %v1387_v30 = vpop.f32.mrf.mxu0 }
 0x929   : > { %v1647_v31 = vmul.f32 -1.702, %v1396_v29  ;;  %v1388_v32 = vadd.f32 %v1640_v27, %v1387_v30 }
 0x92a   : > { %v1800_v33 = vpop.f32.mrf.mxu0 }
 0x92b   : > { %v1411_v34 = vmul.f32 1.442695, %v1647_v31  ;;  %v1645_v35 = vmul.f32 -1.702, %v1388_v32 }
 0x92c   : > { %v1390_v36 = vpop.f32.mrf.mxu0 }
 0x92d   : > { %1951 = vpow2.f32 %v1411_v34  ;;  %v1407_v37 = vmul.f32 1.442695, %v1645_v35  ;;  %v1391_v38 = vadd.f32 %v1640_v27, %v1390_v36 }
 0x92f   : > { %1953 = vpow2.f32 %v1407_v37  ;;  %v1646_v39 = vmul.f32 -1.702, %v1391_v38 }
 0x931   : > { %v1409_v40 = vmul.f32 1.442695, %v1646_v39 }
 0x933   : > { %1955 = vpow2.f32 %v1409_v40 }
 0x93a   : > { %v1952_v43 = vpop.eup %1951 }
 0x93b   : > { %v1415_v42 = vadd.f32 1.0, %v1952_v43 }
 0x93c   : > { %v1954_v45 = vpop.eup %1953 }
 0x93d   : > { %v1413_v47 = vadd.f32 1.0, %v1954_v45  ;;  %1957 = vrcp.f32 %v1415_v42 }
 0x93f   : > { %1959 = vrcp.f32 %v1413_v47 }
 0x940   : > { %v1956_v18 = vpop.eup %1955 }
 0x941   : > { %v1414_v0 = vadd.f32 1.0, %v1956_v18 }
 0x943   : > { %1961 = vrcp.f32 %v1414_v0 }
 0x94a   : > { %v1958_v48 = vpop.eup %1957 }
 0x94b   : > { %v1424_v51 = vmul.f32 %v1958_v48, %v1396_v29 }
 0x94c   : > { %v1960_v1 = vpop.eup %1959 }
 0x94d   : > { %v1422_v53 = vmul.f32 %v1960_v1, %v1388_v32  ;;  %v1426_v2 = vpack.c.bf16 %v1424_v51, %v1424_v51 }
 0x950   : > { %v1962_v24 = vpop.eup %1961 }
 0x951   : > { %v1423_v54 = vmul.f32 %v1962_v24, %v1391_v38 }
 0x953   : > { %v1425_v55 = vpack.c.bf16 %v1423_v54, %v1422_v53 }
 0x955   : > { %1817 = vmatprep.mubr.bf16.mxu1 %v1425_v55 }
 0x956   : > { %1818 = vmatmul.mubr.bf16.vlgmr.msra.gmra.mxu1 %v1426_v2 }
 0xa16   : > { %v1819_v57 = vpop.f32.mrf.mxu1 }
 0xa17   : > { %v1541_v61 = vadd.f32 %v1819_v57, %v1648_v56 }
 0xa18   : > { %v1532_v49 = vpop.f32.mrf.mxu1 }
 0xa19   : > { %v1548_v62 = vadd.f32 %v1541_v61, %v2284_v44  ;;  %v1533_v58 = vadd.f32 %v1648_v56, %v1532_v49 }
 0xa1a   : > { %v1820_v50 = vpop.f32.mrf.mxu1 }
 0xa1b   : > { %1551 = vst.msk [vmem:[%s332_s25 + $0x10] sm:$0x1] %vm344_vm1, %v1548_v62  ;;  %v1546_v52 = vadd.f32 %v1533_v58, %v2281_v41 }
 0xa1c   : > { %v1535_v60 = vpop.f32.mrf.mxu1 }
 0xa1d   : > { %1549 = vst.msk [vmem:[%s332_s25] sm:$0xff] %vm337_vm0, %v1546_v52  ;;  %v1536_v4 = vadd.f32 %v1648_v56, %v1535_v60 }
 0xa1f   : > { %v1547_v6 = vadd.f32 %v1536_v4, %v2289_v46 }
 0xa21   : > { %1550 = vst.msk [vmem:[%s332_s25 + $0x8] sm:$0xff] %vm337_vm0, %v1547_v6 }
 0xa22 PF: > { %s19_s30 = sadd.s32 1, %s1969_s30  }
 0xa23   : > { %p16_p4 = scmp.ge.s32.totalorder %s19_s30, 4  }
 0xa25   :  { %18 = sbr.rel (!%p16_p4) target bundleno = 1 (0x1), region = 86 }

</bundles_post_ra>
